<compile_context>
chip_gen: v7x
topology: tpu7x:2x2x1
jax: 0.10.0
libtpu: 0.0.40
codegen_flags: <defaults>
</compile_context>

<pallas_src>
import math

import jax
import jax.numpy as jnp
from jax.experimental import pallas as pl
from jax.experimental.pallas import tpu as pltpu  # noqa: F401  (TPU backend)

# ---- problem sizes (small, consistent with the module) ----
B = 2        # batch
S = 8        # sequence length
D = 32       # d_model
H = 8        # heads
DK = D // H  # per-head dim (d_hidden == d_model here)
DFF = 4 * D  # feed-forward width
EPS = 1e-5
BS = B * S
BH = B * H


def _layer_norm(v, w, b):
    mu = jnp.mean(v, axis=-1, keepdims=True)
    var = jnp.mean((v - mu) ** 2, axis=-1, keepdims=True)
    return (v - mu) * jax.lax.rsqrt(var + EPS) * w + b


def encoder_layer_kernel(x_ref,
                         ln0_w_ref, ln0_b_ref,
                         wq_ref, bq_ref, wk_ref, bk_ref, wv_ref, bv_ref,
                         wo_ref, bo_ref,
                         ln1_w_ref, ln1_b_ref,
                         w1_ref, b1_ref, w2_ref, b2_ref,
                         out_ref):
    x = x_ref[...]                                        # (B*S, D)

    # ---- sublayer 0: pre-LN multi-head self-attention + residual ----
    h = _layer_norm(x, ln0_w_ref[...], ln0_b_ref[...])    # (B*S, D)

    # Head-batched activations (B*H, S, D): only a tile-aligned sublane split,
    # a leading-dim broadcast and a leading-dim merge.  The head split itself
    # lives in the (pre-transposed) weights.
    hb = jnp.broadcast_to(h.reshape(B, 1, S, D), (B, H, S, D)).reshape(BH, S, D)

    q = jnp.einsum("nsd,ndk->nsk", hb, wq_ref[...],
                   preferred_element_type=jnp.float32) + bq_ref[...]
    k = jnp.einsum("nsd,ndk->nsk", hb, wk_ref[...],
                   preferred_element_type=jnp.float32) + bk_ref[...]
    v = jnp.einsum("nsd,ndk->nsk", hb, wv_ref[...],
                   preferred_element_type=jnp.float32) + bv_ref[...]
    # q, k, v: (B*H, S, DK)

    scale = 1.0 / math.sqrt(DK)
    s = jnp.einsum("nsk,ntk->nst", q, k,
                   preferred_element_type=jnp.float32) * scale        # (B*H, S, S)
    s = s - jnp.max(s, axis=-1, keepdims=True)
    p = jnp.exp(s)
    # One batched reciprocal for all softmax denominators (exact; approx=True
    # was not used to stay safely inside the 1e-4 tolerance).
    p = p * pl.reciprocal(jnp.sum(p, axis=-1, keepdims=True))

    att = jnp.einsum("nst,ntk->nsk", p, v,
                     preferred_element_type=jnp.float32)              # (B*H, S, DK)

    # Output projection without concatenate: batched per-head (S,DK)@(DK,D),
    # then sum the per-head contributions.
    proj = jnp.einsum("nsk,nkd->nsd", att, wo_ref[...],
                      preferred_element_type=jnp.float32)             # (B*H, S, D)
    att_out = (jnp.sum(proj.reshape(B, H, S, D), axis=1).reshape(BS, D)
               + bo_ref[...])

    x1 = x + att_out

    # ---- sublayer 1: pre-LN positionwise feed-forward + residual ----
    h2 = _layer_norm(x1, ln1_w_ref[...], ln1_b_ref[...])
    f = jnp.dot(h2, w1_ref[...], preferred_element_type=jnp.float32) + b1_ref[...]
    f = jnp.maximum(f, 0.0)
    f = jnp.dot(f, w2_ref[...], preferred_element_type=jnp.float32) + b2_ref[...]

    out_ref[...] = x1 + f                                 # one full-slab store


def encoder_layer(x, params):
    """x: (B, S, D) float32; params: list of 16 weight/bias arrays."""
    (ln0_w, ln0_b, wq, bq, wk, bk, wv, bv, wo, bo,
     ln1_w, ln1_b, w1, b1, w2, b2) = params
    Bx, Sx, Dx = x.shape

    # Trace-time layout plumbing (plain JAX, outside the kernel): split the
    # projection weights per head so the kernel never relayouts activations.
    def qkv_w(w):                       # (D, D) -> (B*H, D, DK)
        return jnp.tile(w.reshape(Dx, H, DK).transpose(1, 0, 2), (Bx, 1, 1))

    def qkv_b(b):                       # (1, D) -> (B*H, 1, DK)
        return jnp.tile(b.reshape(H, 1, DK), (Bx, 1, 1))

    wo_h = jnp.tile(wo.reshape(H, DK, Dx), (Bx, 1, 1))    # (B*H, DK, D)

    out = pl.pallas_call(
        encoder_layer_kernel,
        out_shape=jax.ShapeDtypeStruct((Bx * Sx, Dx), x.dtype),
    )(x.reshape(Bx * Sx, Dx),
      ln0_w, ln0_b,
      qkv_w(wq), qkv_b(bq),
      qkv_w(wk), qkv_b(bk),
      qkv_w(wv), qkv_b(bv),
      wo_h, bo,
      ln1_w, ln1_b, w1, b1, w2, b2)
    return out.reshape(Bx, Sx, Dx)


# ---------------- deterministic parameter init (xavier for matrices) --------
def _xavier(key, shape):
    fan_in, fan_out = shape
    limit = math.sqrt(6.0 / (fan_in + fan_out))
    return jax.random.uniform(key, shape, jnp.float32, -limit, limit)


def _bias(key, fan_in, size):
    bound = 1.0 / math.sqrt(fan_in)
    return jax.random.uniform(key, (1, size), jnp.float32, -bound, bound)


def make_params(key):
    ks = jax.random.split(key, 16)
    ln0_w = jnp.ones((1, D), jnp.float32)
    ln0_b = jnp.zeros((1, D), jnp.float32)
    wq, bq = _xavier(ks[0], (D, D)), _bias(ks[1], D, D)
    wk, bk = _xavier(ks[2], (D, D)), _bias(ks[3], D, D)
    wv, bv = _xavier(ks[4], (D, D)), _bias(ks[5], D, D)
    wo, bo = _xavier(ks[6], (D, D)), _bias(ks[7], D, D)
    ln1_w = jnp.ones((1, D), jnp.float32)
    ln1_b = jnp.zeros((1, D), jnp.float32)
    w1, b1 = _xavier(ks[8], (D, DFF)), _bias(ks[9], D, DFF)
    w2, b2 = _xavier(ks[10], (DFF, D)), _bias(ks[11], DFF, D)
    return [ln0_w, ln0_b, wq, bq, wk, bk, wv, bv, wo, bo,
            ln1_w, ln1_b, w1, b1, w2, b2]


# ---------------- pure-JAX reference (for correctness check) ----------------
def reference(x, params):
    (ln0_w, ln0_b, wq, bq, wk, bk, wv, bv, wo, bo,
     ln1_w, ln1_b, w1, b1, w2, b2) = params

    def ln(v, w, b):
        mu = jnp.mean(v, axis=-1, keepdims=True)
        var = jnp.mean((v - mu) ** 2, axis=-1, keepdims=True)
        return (v - mu) / jnp.sqrt(var + EPS) * w[0] + b[0]

    h = ln(x, ln0_w, ln0_b)
    q = h @ wq + bq[0]
    k = h @ wk + bk[0]
    v = h @ wv + bv[0]
    q = q.reshape(B, S, H, DK).transpose(0, 2, 1, 3)
    k = k.reshape(B, S, H, DK).transpose(0, 2, 1, 3)
    v = v.reshape(B, S, H, DK).transpose(0, 2, 1, 3)
    s = jnp.einsum("bhsd,bhtd->bhst", q, k) / math.sqrt(DK)
    p = jax.nn.softmax(s, axis=-1)
    a = jnp.einsum("bhst,bhtd->bhsd", p, v)
    a = a.transpose(0, 2, 1, 3).reshape(B, S, D)
    x1 = x + (a @ wo + bo[0])
    h2 = ln(x1, ln1_w, ln1_b)
    f = jnp.maximum(h2 @ w1 + b1[0], 0.0) @ w2 + b2[0]
    return x1 + f


if __name__ == "__main__":
    key = jax.random.PRNGKey(0)
    kx, kp = jax.random.split(key)
    x = jax.random.normal(kx, (B, S, D), jnp.float32)
    params = make_params(kp)

    out = encoder_layer(x, params)
    out = jax.block_until_ready(out)

    ref = reference(x, params)
    assert out.shape == (B, S, D)
    err = float(jnp.max(jnp.abs(out - ref)))
    assert jnp.allclose(out, ref, atol=1e-4, rtol=1e-4), err
    print("KERNEL_OK")
</pallas_src>

<mosaic_0001>
module attributes {stable_mosaic.version = 11 : i64} {
  func.func @encoder_layer_kernel(%arg0: memref<16x32xf32, #tpu.memory_space<vmem>>, %arg1: memref<1x32xf32, #tpu.memory_space<vmem>>, %arg2: memref<1x32xf32, #tpu.memory_space<vmem>>, %arg3: memref<16x32x4xf32, #tpu.memory_space<vmem>>, %arg4: memref<16x1x4xf32, #tpu.memory_space<vmem>>, %arg5: memref<16x32x4xf32, #tpu.memory_space<vmem>>, %arg6: memref<16x1x4xf32, #tpu.memory_space<vmem>>, %arg7: memref<16x32x4xf32, #tpu.memory_space<vmem>>, %arg8: memref<16x1x4xf32, #tpu.memory_space<vmem>>, %arg9: memref<16x4x32xf32, #tpu.memory_space<vmem>>, %arg10: memref<1x32xf32, #tpu.memory_space<vmem>>, %arg11: memref<1x32xf32, #tpu.memory_space<vmem>>, %arg12: memref<1x32xf32, #tpu.memory_space<vmem>>, %arg13: memref<32x128xf32, #tpu.memory_space<vmem>>, %arg14: memref<1x128xf32, #tpu.memory_space<vmem>>, %arg15: memref<128x32xf32, #tpu.memory_space<vmem>>, %arg16: memref<1x32xf32, #tpu.memory_space<vmem>>, %arg17: memref<16x32xf32, #tpu.memory_space<vmem>>) attributes {dimension_semantics = [], scalar_prefetch = 0 : i64, scratch_operands = 0 : i64, tpu.core_type = #tpu.core_type<tc>} {
    %c0 = arith.constant 0 : index
    %c0_0 = arith.constant 0 : index
    %0 = vector.load %arg0[%c0, %c0_0] : memref<16x32xf32, #tpu.memory_space<vmem>>, vector<16x32xf32>
    %c0_1 = arith.constant 0 : index
    %c0_2 = arith.constant 0 : index
    %1 = vector.load %arg1[%c0_1, %c0_2] : memref<1x32xf32, #tpu.memory_space<vmem>>, vector<1x32xf32>
    %c0_3 = arith.constant 0 : index
    %c0_4 = arith.constant 0 : index
    %2 = vector.load %arg2[%c0_3, %c0_4] : memref<1x32xf32, #tpu.memory_space<vmem>>, vector<1x32xf32>
    %cst = arith.constant dense<0.000000e+00> : vector<16xf32>
    %3 = vector.multi_reduction <add>, %0, %cst [1] : vector<16x32xf32> to vector<16xf32>
    %4 = vector.shape_cast %3 : vector<16xf32> to vector<16x1xf32>
    %cst_5 = arith.constant 3.200000e+01 : f32
    %5 = vector.broadcast %cst_5 : f32 to vector<16x1xf32>
    %6 = arith.divf %4, %5 : vector<16x1xf32>
    %7 = vector.broadcast %6 : vector<16x1xf32> to vector<16x32xf32>
    %8 = arith.subf %0, %7 : vector<16x32xf32>
    %9 = arith.mulf %8, %8 : vector<16x32xf32>
    %cst_6 = arith.constant dense<0.000000e+00> : vector<16xf32>
    %10 = vector.multi_reduction <add>, %9, %cst_6 [1] : vector<16x32xf32> to vector<16xf32>
    %11 = vector.shape_cast %10 : vector<16xf32> to vector<16x1xf32>
    %cst_7 = arith.constant 3.200000e+01 : f32
    %12 = vector.broadcast %cst_7 : f32 to vector<16x1xf32>
    %13 = arith.divf %11, %12 : vector<16x1xf32>
    %14 = vector.broadcast %6 : vector<16x1xf32> to vector<16x32xf32>
    %15 = arith.subf %0, %14 : vector<16x32xf32>
    %cst_8 = arith.constant 9.99999974E-6 : f32
    %16 = vector.broadcast %cst_8 : f32 to vector<16x1xf32>
    %17 = arith.addf %13, %16 : vector<16x1xf32>
    %18 = math.rsqrt %17 : vector<16x1xf32>
    %19 = vector.broadcast %18 : vector<16x1xf32> to vector<16x32xf32>
    %20 = arith.mulf %15, %19 : vector<16x32xf32>
    %21 = vector.broadcast %1 : vector<1x32xf32> to vector<16x32xf32>
    %22 = arith.mulf %20, %21 : vector<16x32xf32>
    %23 = vector.broadcast %2 : vector<1x32xf32> to vector<16x32xf32>
    %24 = arith.addf %22, %23 : vector<16x32xf32>
    %25 = vector.shape_cast %24 : vector<16x32xf32> to vector<2x1x8x32xf32>
    %26 = vector.shape_cast %25 : vector<2x1x8x32xf32> to vector<2x1x8x32xf32>
    %27 = vector.broadcast %26 : vector<2x1x8x32xf32> to vector<2x8x8x32xf32>
    %28 = vector.shape_cast %27 : vector<2x8x8x32xf32> to vector<16x8x32xf32>
    %c0_9 = arith.constant 0 : index
    %c0_10 = arith.constant 0 : index
    %c0_11 = arith.constant 0 : index
    %29 = vector.load %arg3[%c0_9, %c0_10, %c0_11] : memref<16x32x4xf32, #tpu.memory_space<vmem>>, vector<16x32x4xf32>
    "tpu.trace_start"() <{level = 10 : i32, message = "nsd,ndk->nsk"}> : () -> ()
    %cst_12 = arith.constant dense<0.000000e+00> : vector<16x8x4xf32>
    %30 = tpu.matmul %28, %29, %cst_12 {dimension_numbers = #tpu.dot_dimension_numbers<[2], [1], [1], [2], [0, 0, 0, 1, 1, 2], [0], [0]>} : vector<16x8x32xf32>, vector<16x32x4xf32>, vector<16x8x4xf32> -> vector<16x8x4xf32>
    "tpu.trace_stop"() : () -> ()
    %c0_13 = arith.constant 0 : index
    %c0_14 = arith.constant 0 : index
    %c0_15 = arith.constant 0 : index
    %31 = vector.load %arg4[%c0_13, %c0_14, %c0_15] : memref<16x1x4xf32, #tpu.memory_space<vmem>>, vector<16x1x4xf32>
    %32 = vector.broadcast %31 : vector<16x1x4xf32> to vector<16x8x4xf32>
    %33 = arith.addf %30, %32 : vector<16x8x4xf32>
    %c0_16 = arith.constant 0 : index
    %c0_17 = arith.constant 0 : index
    %c0_18 = arith.constant 0 : index
    %34 = vector.load %arg5[%c0_16, %c0_17, %c0_18] : memref<16x32x4xf32, #tpu.memory_space<vmem>>, vector<16x32x4xf32>
    "tpu.trace_start"() <{level = 10 : i32, message = "nsd,ndk->nsk"}> : () -> ()
    %cst_19 = arith.constant dense<0.000000e+00> : vector<16x8x4xf32>
    %35 = tpu.matmul %28, %34, %cst_19 {dimension_numbers = #tpu.dot_dimension_numbers<[2], [1], [1], [2], [0, 0, 0, 1, 1, 2], [0], [0]>} : vector<16x8x32xf32>, vector<16x32x4xf32>, vector<16x8x4xf32> -> vector<16x8x4xf32>
    "tpu.trace_stop"() : () -> ()
    %c0_20 = arith.constant 0 : index
    %c0_21 = arith.constant 0 : index
    %c0_22 = arith.constant 0 : index
    %36 = vector.load %arg6[%c0_20, %c0_21, %c0_22] : memref<16x1x4xf32, #tpu.memory_space<vmem>>, vector<16x1x4xf32>
    %37 = vector.broadcast %36 : vector<16x1x4xf32> to vector<16x8x4xf32>
    %38 = arith.addf %35, %37 : vector<16x8x4xf32>
    %c0_23 = arith.constant 0 : index
    %c0_24 = arith.constant 0 : index
    %c0_25 = arith.constant 0 : index
    %39 = vector.load %arg7[%c0_23, %c0_24, %c0_25] : memref<16x32x4xf32, #tpu.memory_space<vmem>>, vector<16x32x4xf32>
    "tpu.trace_start"() <{level = 10 : i32, message = "nsd,ndk->nsk"}> : () -> ()
    %cst_26 = arith.constant dense<0.000000e+00> : vector<16x8x4xf32>
    %40 = tpu.matmul %28, %39, %cst_26 {dimension_numbers = #tpu.dot_dimension_numbers<[2], [1], [1], [2], [0, 0, 0, 1, 1, 2], [0], [0]>} : vector<16x8x32xf32>, vector<16x32x4xf32>, vector<16x8x4xf32> -> vector<16x8x4xf32>
    "tpu.trace_stop"() : () -> ()
    %c0_27 = arith.constant 0 : index
    %c0_28 = arith.constant 0 : index
    %c0_29 = arith.constant 0 : index
    %41 = vector.load %arg8[%c0_27, %c0_28, %c0_29] : memref<16x1x4xf32, #tpu.memory_space<vmem>>, vector<16x1x4xf32>
    %42 = vector.broadcast %41 : vector<16x1x4xf32> to vector<16x8x4xf32>
    %43 = arith.addf %40, %42 : vector<16x8x4xf32>
    "tpu.trace_start"() <{level = 10 : i32, message = "nsk,ntk->nst"}> : () -> ()
    %cst_30 = arith.constant dense<0.000000e+00> : vector<16x8x8xf32>
    %44 = tpu.matmul %33, %38, %cst_30 {dimension_numbers = #tpu.dot_dimension_numbers<[2], [2], [1], [1], [0, 0, 0, 1, 1, 1], [0], [0]>} : vector<16x8x4xf32>, vector<16x8x4xf32>, vector<16x8x8xf32> -> vector<16x8x8xf32>
    "tpu.trace_stop"() : () -> ()
    %cst_31 = arith.constant 5.000000e-01 : f32
    %45 = vector.broadcast %cst_31 : f32 to vector<16x8x8xf32>
    %46 = arith.mulf %44, %45 : vector<16x8x8xf32>
    %cst_32 = arith.constant dense<0xFF800000> : vector<16x8xf32>
    %47 = vector.multi_reduction <maximumf>, %46, %cst_32 [2] : vector<16x8x8xf32> to vector<16x8xf32>
    %48 = vector.shape_cast %47 : vector<16x8xf32> to vector<16x8x1xf32>
    %49 = vector.broadcast %48 : vector<16x8x1xf32> to vector<16x8x8xf32>
    %50 = arith.subf %46, %49 : vector<16x8x8xf32>
    %51 = math.exp %50 : vector<16x8x8xf32>
    %cst_33 = arith.constant dense<0.000000e+00> : vector<16x8xf32>
    %52 = vector.multi_reduction <add>, %51, %cst_33 [2] : vector<16x8x8xf32> to vector<16x8xf32>
    %53 = vector.shape_cast %52 : vector<16x8xf32> to vector<16x8x1xf32>
    %54 = tpu.reciprocal %53 : vector<16x8x1xf32> -> vector<16x8x1xf32>
    %55 = vector.broadcast %54 : vector<16x8x1xf32> to vector<16x8x8xf32>
    %56 = arith.mulf %51, %55 : vector<16x8x8xf32>
    "tpu.trace_start"() <{level = 10 : i32, message = "nst,ntk->nsk"}> : () -> ()
    %cst_34 = arith.constant dense<0.000000e+00> : vector<16x8x4xf32>
    %57 = tpu.matmul %56, %43, %cst_34 {dimension_numbers = #tpu.dot_dimension_numbers<[2], [1], [1], [2], [0, 0, 0, 1, 1, 2], [0], [0]>} : vector<16x8x8xf32>, vector<16x8x4xf32>, vector<16x8x4xf32> -> vector<16x8x4xf32>
    "tpu.trace_stop"() : () -> ()
    %c0_35 = arith.constant 0 : index
    %c0_36 = arith.constant 0 : index
    %c0_37 = arith.constant 0 : index
    %58 = vector.load %arg9[%c0_35, %c0_36, %c0_37] : memref<16x4x32xf32, #tpu.memory_space<vmem>>, vector<16x4x32xf32>
    "tpu.trace_start"() <{level = 10 : i32, message = "nsk,nkd->nsd"}> : () -> ()
    %cst_38 = arith.constant dense<0.000000e+00> : vector<16x8x32xf32>
    %59 = tpu.matmul %57, %58, %cst_38 {dimension_numbers = #tpu.dot_dimension_numbers<[2], [1], [1], [2], [0, 0, 0, 1, 1, 2], [0], [0]>} : vector<16x8x4xf32>, vector<16x4x32xf32>, vector<16x8x32xf32> -> vector<16x8x32xf32>
    "tpu.trace_stop"() : () -> ()
    %60 = vector.shape_cast %59 : vector<16x8x32xf32> to vector<2x8x8x32xf32>
    %cst_39 = arith.constant dense<0.000000e+00> : vector<2x8x32xf32>
    %61 = vector.multi_reduction <add>, %60, %cst_39 [1] : vector<2x8x8x32xf32> to vector<2x8x32xf32>
    %62 = vector.shape_cast %61 : vector<2x8x32xf32> to vector<16x32xf32>
    %c0_40 = arith.constant 0 : index
    %c0_41 = arith.constant 0 : index
    %63 = vector.load %arg10[%c0_40, %c0_41] : memref<1x32xf32, #tpu.memory_space<vmem>>, vector<1x32xf32>
    %64 = vector.broadcast %63 : vector<1x32xf32> to vector<16x32xf32>
    %65 = arith.addf %62, %64 : vector<16x32xf32>
    %66 = arith.addf %0, %65 : vector<16x32xf32>
    %c0_42 = arith.constant 0 : index
    %c0_43 = arith.constant 0 : index
    %67 = vector.load %arg11[%c0_42, %c0_43] : memref<1x32xf32, #tpu.memory_space<vmem>>, vector<1x32xf32>
    %c0_44 = arith.constant 0 : index
    %c0_45 = arith.constant 0 : index
    %68 = vector.load %arg12[%c0_44, %c0_45] : memref<1x32xf32, #tpu.memory_space<vmem>>, vector<1x32xf32>
    %cst_46 = arith.constant dense<0.000000e+00> : vector<16xf32>
    %69 = vector.multi_reduction <add>, %66, %cst_46 [1] : vector<16x32xf32> to vector<16xf32>
    %70 = vector.shape_cast %69 : vector<16xf32> to vector<16x1xf32>
    %cst_47 = arith.constant 3.200000e+01 : f32
    %71 = vector.broadcast %cst_47 : f32 to vector<16x1xf32>
    %72 = arith.divf %70, %71 : vector<16x1xf32>
    %73 = vector.broadcast %72 : vector<16x1xf32> to vector<16x32xf32>
    %74 = arith.subf %66, %73 : vector<16x32xf32>
    %75 = arith.mulf %74, %74 : vector<16x32xf32>
    %cst_48 = arith.constant dense<0.000000e+00> : vector<16xf32>
    %76 = vector.multi_reduction <add>, %75, %cst_48 [1] : vector<16x32xf32> to vector<16xf32>
    %77 = vector.shape_cast %76 : vector<16xf32> to vector<16x1xf32>
    %cst_49 = arith.constant 3.200000e+01 : f32
    %78 = vector.broadcast %cst_49 : f32 to vector<16x1xf32>
    %79 = arith.divf %77, %78 : vector<16x1xf32>
    %80 = vector.broadcast %72 : vector<16x1xf32> to vector<16x32xf32>
    %81 = arith.subf %66, %80 : vector<16x32xf32>
    %cst_50 = arith.constant 9.99999974E-6 : f32
    %82 = vector.broadcast %cst_50 : f32 to vector<16x1xf32>
    %83 = arith.addf %79, %82 : vector<16x1xf32>
    %84 = math.rsqrt %83 : vector<16x1xf32>
    %85 = vector.broadcast %84 : vector<16x1xf32> to vector<16x32xf32>
    %86 = arith.mulf %81, %85 : vector<16x32xf32>
    %87 = vector.broadcast %67 : vector<1x32xf32> to vector<16x32xf32>
    %88 = arith.mulf %86, %87 : vector<16x32xf32>
    %89 = vector.broadcast %68 : vector<1x32xf32> to vector<16x32xf32>
    %90 = arith.addf %88, %89 : vector<16x32xf32>
    %c0_51 = arith.constant 0 : index
    %c0_52 = arith.constant 0 : index
    %91 = vector.load %arg13[%c0_51, %c0_52] : memref<32x128xf32, #tpu.memory_space<vmem>>, vector<32x128xf32>
    %cst_53 = arith.constant dense<0.000000e+00> : vector<16x128xf32>
    %92 = tpu.matmul %90, %91, %cst_53 {dimension_numbers = #tpu.dot_dimension_numbers<[1], [0], [0], [1], [0, 0, 1, 1], [], []>} : vector<16x32xf32>, vector<32x128xf32>, vector<16x128xf32> -> vector<16x128xf32>
    %c0_54 = arith.constant 0 : index
    %c0_55 = arith.constant 0 : index
    %93 = vector.load %arg14[%c0_54, %c0_55] : memref<1x128xf32, #tpu.memory_space<vmem>>, vector<1x128xf32>
    %94 = vector.broadcast %93 : vector<1x128xf32> to vector<16x128xf32>
    %95 = arith.addf %92, %94 : vector<16x128xf32>
    %cst_56 = arith.constant 0.000000e+00 : f32
    %96 = vector.broadcast %cst_56 : f32 to vector<16x128xf32>
    %97 = arith.maximumf %95, %96 : vector<16x128xf32>
    %c0_57 = arith.constant 0 : index
    %c0_58 = arith.constant 0 : index
    %98 = vector.load %arg15[%c0_57, %c0_58] : memref<128x32xf32, #tpu.memory_space<vmem>>, vector<128x32xf32>
    %cst_59 = arith.constant dense<0.000000e+00> : vector<16x32xf32>
    %99 = tpu.matmul %97, %98, %cst_59 {dimension_numbers = #tpu.dot_dimension_numbers<[1], [0], [0], [1], [0, 0, 1, 1], [], []>} : vector<16x128xf32>, vector<128x32xf32>, vector<16x32xf32> -> vector<16x32xf32>
    %c0_60 = arith.constant 0 : index
    %c0_61 = arith.constant 0 : index
    %100 = vector.load %arg16[%c0_60, %c0_61] : memref<1x32xf32, #tpu.memory_space<vmem>>, vector<1x32xf32>
    %101 = vector.broadcast %100 : vector<1x32xf32> to vector<16x32xf32>
    %102 = arith.addf %99, %101 : vector<16x32xf32>
    %103 = arith.addf %66, %102 : vector<16x32xf32>
    %c0_62 = arith.constant 0 : index
    %c0_63 = arith.constant 0 : index
    %104 = vector.load %arg17[%c0_62, %c0_63] : memref<16x32xf32, #tpu.memory_space<vmem>>, vector<16x32xf32>
    tpu.vector_store %arg17[%c0_62, %c0_63], %103 {strides = array<i32>} : memref<16x32xf32, #tpu.memory_space<vmem>>, vector<16x32xf32>,
    return
  }
}

</mosaic_0001>

<bundles_post_ra>
// kernel: tpu_custom_call.1
= control target key start
LH: loop header
LB: loop body
LE: loop exit
PB: predicated region body
PF: predicated region fallthrough
CT: control target
= control target key end

     0   :  { %s11680_s0 = inlined_call_operand.vmem [shape: f32[16,32], index: 0, kind: input, shape index: {}]   ;;  %s11681_s1 = inlined_call_operand.vmem [shape: f32[1,32], index: 1, kind: input, shape index: {}]   ;;  %s11682_s2 = inlined_call_operand.vmem [shape: f32[1,32], index: 2, kind: input, shape index: {}]   ;;  %s11683_s3 = inlined_call_operand.vmem [shape: f32[16,32,4], index: 3, kind: input, shape index: {}]   ;;  %s11684_s4 = inlined_call_operand.vmem [shape: f32[16,1,4], index: 4, kind: input, shape index: {}]   ;;  %s11685_s5 = inlined_call_operand.vmem [shape: f32[16,32,4], index: 5, kind: input, shape index: {}]   ;;  %s11686_s6 = inlined_call_operand.vmem [shape: f32[16,1,4], index: 6, kind: input, shape index: {}]   ;;  %s11687_s7 = inlined_call_operand.vmem [shape: f32[16,32,4], index: 7, kind: input, shape index: {}]   ;;  %s11688_s8 = inlined_call_operand.vmem [shape: f32[16,1,4], index: 8, kind: input, shape index: {}]   ;;  %s11689_s9 = inlined_call_operand.vmem [shape: f32[16,4,32], index: 9, kind: input, shape index: {}]   ;;  %s11690_s10 = inlined_call_operand.vmem [shape: f32[1,32], index: 10, kind: input, shape index: {}]   ;;  %s11691_s11 = inlined_call_operand.vmem [shape: f32[1,32], index: 11, kind: input, shape index: {}]   ;;  %s11692_s12 = inlined_call_operand.vmem [shape: f32[1,32], index: 12, kind: input, shape index: {}]   ;;  %s11693_s13 = inlined_call_operand.vmem [shape: f32[32,128], index: 13, kind: input, shape index: {}]   ;;  %s11694_s14 = inlined_call_operand.vmem [shape: f32[1,128], index: 14, kind: input, shape index: {}]   ;;  %s11695_s15 = inlined_call_operand.vmem [shape: f32[128,32], index: 15, kind: input, shape index: {}]   ;;  %s11696_s16 = inlined_call_operand.vmem [shape: f32[1,32], index: 16, kind: input, shape index: {}]   ;;  %s11697_s17 = inlined_call_operand.hbm [shape: f32[16,32], index: 17, kind: output, shape index: {}]  }
   0x1   :  { %11699 = sst [smem:[#allocation5_spill]] %s11680_s0 }
   0x2   :  { %11700 = sst [smem:[#allocation6_spill]] %s11681_s1 }
   0x3   :  { %s11701_s26 = sld [smem:[#allocation5_spill]]  ;;  %vm61_vm0 = vcmask 261120  }
   0x9   :  { %v57_v0 = vld [vmem:[%s11701_s26] sm:$0xff]  ;;  %v58_v1 = vld [vmem:[%s11701_s26 + $0x8] sm:$0xff] }
   0xa   :  { %22 = vsyncpa [#allocation3], 0  ;;  %v62_v2 = vsel %vm61_vm0, %v57_v0, 0.0  ;;  %v65_v3 = vsel %vm61_vm0, %v58_v1, 0.0  ;;  %v105_v14 = vld [vmem:[%s11683_s3] sm:$0xff]  ;;  %v106_v15 = vld [vmem:[%s11683_s3 + $0x8] sm:$0xff] }
   0xb   :  { %63 = vadd.xlane.f32.xlu0 %v62_v2  ;;  %v117_v16 = vld [vmem:[%s11683_s3 + $0x60] sm:$0xff]  ;;  %v9467_v17 = vpack.c.bf16 %v106_v15, %v105_v14  ;;  %v118_v18 = vld [vmem:[%s11683_s3 + $0x68] sm:$0xff]  ;;  %v9898_v19 = vmov 0.0|0.0   ;;  %v107_v21 = vld [vmem:[%s11683_s3 + $0x10] sm:$0xff]  ;;  %vm9899_vm1 = vmmov 0   ;;  %v9900_v27 = vmov 0.0  }
   0xc   :  { %9466 = vmatprep.subr.bf16.mxu0 %v9898_v19  ;;  %9484 = vmatprep.subr.bf16.mxu1 %v9898_v19  ;;  %v9485_v20 = vpack.c.bf16 %v118_v18, %v117_v16  ;;  %v108_v22 = vld [vmem:[%s11683_s3 + $0x18] sm:$0xff]  ;;  %v119_v23 = vld [vmem:[%s11683_s3 + $0x70] sm:$0xff]  ;;  %s11702_s19 = sld [smem:[#allocation6_spill]]  ;;  %v109_v35 = vld [vmem:[%s11683_s3 + $0x20] sm:$0xff]  ;;  %vm3999_vm2 = vcmask 31744   ;;  %vm5232_vm3 = vcmask 64512  }
   0xd   :  { %9468 = vmatpush3.bf16.msra.mxu0 %v9467_v17  ;;  %v9470_v24 = vpack.c.bf16 %v108_v22, %v107_v21  ;;  %v120_v25 = vld [vmem:[%s11683_s3 + $0x78] sm:$0xff]  ;;  %8660 = vmatprep.mubr.msk.f32.mxu0 %vm9899_vm1, %v9900_v27  ;;  %v110_v37 = vld [vmem:[%s11683_s3 + $0x28] sm:$0xff]  ;;  %v125_v38 = vld [vmem:[%s11683_s3 + $0xa0] sm:$0xff]  ;;  %vm6596_vm4 = vcmask 1043456  }
   0xe   :  { %9486 = vmatpush3.bf16.msra.mxu1 %v9485_v20  ;;  %9469 = vmatprep.subr.bf16.mxu0 %v9898_v19  ;;  %v9488_v26 = vpack.c.bf16 %v120_v25, %v119_v23  ;;  %v126_v39 = vld [vmem:[%s11683_s3 + $0xa8] sm:$0xff]  ;;  %v10062_v40 = vld [vmem:[%s11682_s2] ss:$0 sm:$0xff]  ;;  %v9473_v43 = vpack.c.bf16 %v110_v37, %v109_v35  ;;  %v111_v45 = vld [vmem:[%s11683_s3 + $0x30] sm:$0xff] }
   0xf   :  { %66 = vadd.xlane.f32.xlu0 %v65_v3  ;;  %9487 = vmatprep.subr.bf16.mxu1 %v9898_v19  ;;  %v9497_v44 = vpack.c.bf16 %v126_v39, %v125_v38  ;;  %v112_v47 = vld [vmem:[%s11683_s3 + $0x38] sm:$0xff]  ;;  %v127_v48 = vld [vmem:[%s11683_s3 + $0xb0] sm:$0xff]  ;;  %v113_v52 = vld [vmem:[%s11683_s3 + $0x40] sm:$0xff] }
  0x10   :  { %8693 = vmatprep.mubr.msk.f32.mxu1 %vm9899_vm1, %v9900_v27  ;;  %v128_v49 = vld [vmem:[%s11683_s3 + $0xb8] sm:$0xff]  ;;  %v9476_v50 = vpack.c.bf16 %v112_v47, %v111_v45  ;;  %v114_v53 = vld [vmem:[%s11683_s3 + $0x48] sm:$0xff]  ;;  %v133_v54 = vld [vmem:[%s11683_s3 + $0xe0] sm:$0xff] }
  0x11   :  { %9471 = vmatpush3.bf16.msra.mxu0 %v9470_v24  ;;  %v9500_v51 = vpack.c.bf16 %v128_v49, %v127_v48  ;;  %v134_v55 = vld [vmem:[%s11683_s3 + $0xe8] sm:$0xff]  ;;  %v9479_v56 = vpack.c.bf16 %v114_v53, %v113_v52  ;;  %v115_v58 = vld [vmem:[%s11683_s3 + $0x50] sm:$0xff]  ;;  %v116_v59 = vld [vmem:[%s11683_s3 + $0x58] sm:$0xff] }
  0x12   :  { %9489 = vmatpush3.bf16.msra.mxu1 %v9488_v26  ;;  %9472 = vmatprep.subr.bf16.mxu0 %v9898_v19  ;;  %v10045_v33 = vld [vmem:[%s11702_s19] ss:$0 sm:$0xff]  ;;  %v9509_v57 = vpack.c.bf16 %v134_v55, %v133_v54  ;;  %v135_v60 = vld [vmem:[%s11683_s3 + $0xf0] sm:$0xff]  ;;  %v136_v61 = vld [vmem:[%s11683_s3 + $0xf8] sm:$0xff]  ;;  %v9482_v62 = vpack.c.bf16 %v116_v59, %v115_v58 }
  0x13   :  { %9496 = vmatprep.subr.bf16.mxu1 %v9898_v19  ;;  %v9512_v63 = vpack.c.bf16 %v136_v61, %v135_v60  ;;  %v141_v2 = vld [vmem:[%s11683_s3 + $0x120] sm:$0xff]  ;;  %v142_v3 = vld [vmem:[%s11683_s3 + $0x128] sm:$0xff]  ;;  %v131_v22 = vld [vmem:[%s11683_s3 + $0xd0] sm:$0xff] }
  0x14   :  { %v129_v14 = vld [vmem:[%s11683_s3 + $0xc0] sm:$0xff]  ;;  %v130_v16 = vld [vmem:[%s11683_s3 + $0xc8] sm:$0xff]  ;;  %v132_v24 = vld [vmem:[%s11683_s3 + $0xd8] sm:$0xff] }
  0x15   :  { %v149_v17 = vld [vmem:[%s11683_s3 + $0x160] sm:$0xff]  ;;  %v150_v18 = vld [vmem:[%s11683_s3 + $0x168] sm:$0xff]  ;;  %v9503_v20 = vpack.c.bf16 %v130_v16, %v129_v14  ;;  %v151_v25 = vld [vmem:[%s11683_s3 + $0x170] sm:$0xff] }
  0x16   :  { %v9533_v21 = vpack.c.bf16 %v150_v18, %v149_v17  ;;  %v152_v26 = vld [vmem:[%s11683_s3 + $0x178] sm:$0xff]  ;;  %v159_v38 = vld [vmem:[%s11683_s3 + $0x1b0] sm:$0xff]  ;;  %v166_v45 = vld [vmem:[%s11683_s3 + $0x1e8] sm:$0xff] }
  0x17   :  { %v140_v37 = vld [vmem:[%s11683_s3 + $0x118] sm:$0xff]  ;;  %v147_v49 = vld [vmem:[%s11683_s3 + $0x150] sm:$0xff]  ;;  %v153_v55 = vld [vmem:[%s11683_s3 + $0x180] sm:$0xff] }
  0x18   :  { %v160_v39 = vld [vmem:[%s11683_s3 + $0x1b8] sm:$0xff]  ;;  %v1412_v58 = vld [vmem:[%s11685_s5 + $0x28] sm:$0xff]  ;;  %v155_v61 = vld [vmem:[%s11683_s3 + $0x190] sm:$0xff] }
  0x19   :  { %v168_v52 = vld [vmem:[%s11683_s3 + $0x1f8] sm:$0xff]  ;;  %v1408_v16 = vld [vmem:[%s11685_s5 + $0x8] sm:$0xff]  ;;  %v1427_v17 = vld [vmem:[%s11685_s5 + $0xa0] sm:$0xff] }
  0x1a   :  { %v1428_v18 = vld [vmem:[%s11685_s5 + $0xa8] sm:$0xff] }
  0x98   :  { %v64_v4 = vpop.xlane.xlu0 %63 }
  0x99   :  { %v69_v5 = vmul.f32 0.03125, %v64_v4 }
  0x9b   :  { %v71_v6 = vsub.f32 %v57_v0, %v69_v5  ;;  %v121_v0 = vld [vmem:[%s11683_s3 + $0x80] sm:$0xff] }
  0x9c   :  { %v67_v7 = vpop.xlane.xlu0 %66 }
  0x9d   :  { %v70_v8 = vmul.f32 0.03125, %v67_v7  ;;  %v73_v9 = vmul.f32 %v71_v6, %v71_v6  ;;  %v123_v7 = vld [vmem:[%s11683_s3 + $0x90] sm:$0xff] }
  0x9f   :  { %v10002_v10 = vsub.f32 %v58_v1, %v70_v8  ;;  %v75_v11 = vsel %vm61_vm0, %v73_v9, 0.0  ;;  %v122_v1 = vld [vmem:[%s11683_s3 + $0x88] sm:$0xff]  ;;  %v124_v9 = vld [vmem:[%s11683_s3 + $0x98] sm:$0xff] }
  0xa0   :  { %76 = vadd.xlane.f32.xlu1 %v75_v11  ;;  %v9491_v5 = vpack.c.bf16 %v122_v1, %v121_v0  ;;  %v143_v11 = vld [vmem:[%s11683_s3 + $0x130] sm:$0xff]  ;;  %v1414_v0 = vld [vmem:[%s11685_s5 + $0x38] sm:$0xff] }
  0xa1   :  { %v74_v12 = vmul.f32 %v10002_v10, %v10002_v10 }
  0xa3   :  { %v78_v13 = vsel %vm61_vm0, %v74_v12, 0.0  ;;  %v144_v12 = vld [vmem:[%s11683_s3 + $0x138] sm:$0xff] }
  0xa4   :  { %79 = vadd.xlane.f32.xlu1 %v78_v13  ;;  %v9524_v13 = vpack.c.bf16 %v144_v12, %v143_v11  ;;  %v164_v11 = vld [vmem:[%s11683_s3 + $0x1d8] sm:$0xff]  ;;  %v1421_v12 = vld [vmem:[%s11685_s5 + $0x70] sm:$0xff] }
 0x12d   :  { %v77_v28 = vpop.xlane.xlu1 %76 }
 0x12e   :  { %v81_v29 = vmul.f32 0.03125, %v77_v28  ;;  %v9506_v28 = vpack.c.bf16 %v132_v24, %v131_v22  ;;  %v1409_v22 = vld [vmem:[%s11685_s5 + $0x10] sm:$0xff]  ;;  %v1410_v24 = vld [vmem:[%s11685_s5 + $0x18] sm:$0xff] }
 0x130   :  { %v83_v30 = vadd.f32 1e-05, %v81_v29  ;;  %v9536_v29 = vpack.c.bf16 %v152_v26, %v151_v25  ;;  %v1429_v25 = vld [vmem:[%s11685_s5 + $0xb0] sm:$0xff]  ;;  %v1430_v26 = vld [vmem:[%s11685_s5 + $0xb8] sm:$0xff] }
 0x131   :  { %v80_v31 = vpop.xlane.xlu1 %79 }
 0x132   :  { %9800 = vrsqrt.f32 %v83_v30  ;;  %v82_v34 = vmul.f32 0.03125, %v80_v31  ;;  %v137_v30 = vld [vmem:[%s11683_s3 + $0x100] sm:$0xff]  ;;  %v138_v31 = vld [vmem:[%s11683_s3 + $0x108] sm:$0xff] }
 0x134   :  { %v84_v42 = vadd.f32 1e-05, %v82_v34  ;;  %v9515_v34 = vpack.c.bf16 %v138_v31, %v137_v30  ;;  %v1415_v30 = vld [vmem:[%s11685_s5 + $0x40] sm:$0xff]  ;;  %v1416_v31 = vld [vmem:[%s11685_s5 + $0x48] sm:$0xff] }
 0x136   :  { %9802 = vrsqrt.f32 %v84_v42  ;;  %v145_v42 = vld [vmem:[%s11683_s3 + $0x140] sm:$0xff] }
 0x13c   :  { %v9801_v32 = vpop.eup %9800 }
 0x13d   :  { %v87_v36 = vmul.f32 %v9801_v32, %v71_v6  ;;  %v9521_v6 = vpack.c.bf16 %v142_v3, %v141_v2  ;;  %v157_v32 = vld [vmem:[%s11683_s3 + $0x1a0] sm:$0xff] }
 0x13e   :  { %v161_v3 = vld [vmem:[%s11683_s3 + $0x1c0] sm:$0xff] }
 0x13f   :  { %v95_v41 = vmul.f32 %v10045_v33, %v87_v36  ;;  %v139_v36 = vld [vmem:[%s11683_s3 + $0x110] sm:$0xff] }
 0x140   :  { %v9803_v4 = vpop.eup %9802 }
 0x141   :  { %v10069_v46 = vadd.f32 %v10062_v40, %v95_v41  ;;  %v88_v8 = vmul.f32 %v9803_v4, %v10002_v10  ;;  %v9494_v10 = vpack.c.bf16 %v124_v9, %v123_v7  ;;  %v9548_v41 = vpack.c.bf16 %v160_v39, %v159_v38  ;;  %v162_v4 = vld [vmem:[%s11683_s3 + $0x1c8] sm:$0xff]  ;;  %v163_v9 = vld [vmem:[%s11683_s3 + $0x1d0] sm:$0xff]  ;;  %v1438_v39 = vld [vmem:[%s11685_s5 + $0xf8] sm:$0xff] }
 0x142   :  { %v9551_v7 = vpack.c.bf16 %v162_v4, %v161_v3  ;;  %v1437_v38 = vld [vmem:[%s11685_s5 + $0xf0] sm:$0xff]  ;;  %v1439_v3 = vld [vmem:[%s11685_s5 + $0x100] sm:$0xff]  ;;  %v1440_v4 = vld [vmem:[%s11685_s5 + $0x108] sm:$0xff] }
 0x143   :  { %8661 = vmatmul.mubr.msk.f32.vlgmr.msra.gmra.mrb[0].mxu0 %vm61_vm0, %v10069_v46  ;;  %8694 = vmatmul.mubr.msk.f32.vlgmr.msra.gmra.mrb[0].mxu1 %vm61_vm0, %v10069_v46  ;;  %v96_v15 = vmul.f32 %v10045_v33, %v88_v8  ;;  %v158_v33 = vld [vmem:[%s11683_s3 + $0x1a8] sm:$0xff] }
 0x144   :  { %9474 = vmatpush3.bf16.msra.mxu0 %v9473_v43  ;;  %9498 = vmatpush3.bf16.msra.mxu1 %v9497_v44  ;;  %v9545_v35 = vpack.c.bf16 %v158_v33, %v157_v32  ;;  %v146_v43 = vld [vmem:[%s11683_s3 + $0x148] sm:$0xff]  ;;  %v165_v44 = vld [vmem:[%s11683_s3 + $0x1e0] sm:$0xff] }
 0x145   :  { %9475 = vmatprep.subr.bf16.mxu0 %v9898_v19  ;;  %9499 = vmatprep.subr.bf16.mxu1 %v9898_v19  ;;  %v10180_v23 = vadd.f32 %v10062_v40, %v96_v15  ;;  %v9518_v40 = vpack.c.bf16 %v140_v37, %v139_v36  ;;  %v9527_v47 = vpack.c.bf16 %v146_v43, %v145_v42  ;;  %v1407_v15 = vld [vmem:[%s11685_s5] sm:$0xff]  ;;  %v1436_v33 = vld [vmem:[%s11685_s5 + $0xe8] sm:$0xff]  ;;  %v1417_v36 = vld [vmem:[%s11685_s5 + $0x50] sm:$0xff] }
 0x146   :  { %8671 = vmatprep.mubr.msk.f32.mxu0 %vm9899_vm1, %v9900_v27  ;;  %8715 = vmatprep.mubr.msk.f32.mxu1 %vm9899_vm1, %v9900_v27  ;;  %v9557_v48 = vpack.c.bf16 %v166_v45, %v165_v44  ;;  %v1435_v32 = vld [vmem:[%s11685_s5 + $0xe0] sm:$0xff]  ;;  %v1418_v37 = vld [vmem:[%s11685_s5 + $0x58] sm:$0xff]  ;;  %v1424_v43 = vld [vmem:[%s11685_s5 + $0x88] sm:$0xff] }
 0x147   :  { %v1423_v42 = vld [vmem:[%s11685_s5 + $0x80] sm:$0xff]  ;;  %v1444_v45 = vld [vmem:[%s11685_s5 + $0x128] sm:$0xff] }
 0x148   :  { %9477 = vmatpush3.bf16.msra.mxu0 %v9476_v50  ;;  %9501 = vmatpush3.bf16.msra.mxu1 %v9500_v51  ;;  %v148_v50 = vld [vmem:[%s11683_s3 + $0x158] sm:$0xff]  ;;  %v167_v51 = vld [vmem:[%s11683_s3 + $0x1f0] sm:$0xff]  ;;  %v1443_v44 = vld [vmem:[%s11685_s5 + $0x120] sm:$0xff] }
 0x149   :  { %9478 = vmatprep.subr.bf16.mxu0 %v9898_v19  ;;  %9508 = vmatprep.subr.bf16.mxu1 %v9898_v19  ;;  %v9530_v53 = vpack.c.bf16 %v148_v50, %v147_v49  ;;  %v9560_v54 = vpack.c.bf16 %v168_v52, %v167_v51  ;;  %v1425_v49 = vld [vmem:[%s11685_s5 + $0x90] sm:$0xff]  ;;  %v1426_v50 = vld [vmem:[%s11685_s5 + $0x98] sm:$0xff] }
 0x14a   :  { %v1445_v51 = vld [vmem:[%s11685_s5 + $0x130] sm:$0xff]  ;;  %v1446_v52 = vld [vmem:[%s11685_s5 + $0x138] sm:$0xff] }
 0x14b   :  { %8672 = vmatmul.mubr.msk.f32.vlgmr.msra.gmra.mrb[2].mxu0 %vm61_vm0, %v10069_v46  ;;  %8716 = vmatmul.mubr.msk.f32.vlgmr.msra.gmra.mrb[2].mxu1 %vm61_vm0, %v10069_v46 }
 0x14c   :  { %9480 = vmatpush3.bf16.msra.mxu0 %v9479_v56  ;;  %9510 = vmatpush3.bf16.msra.mxu1 %v9509_v57  ;;  %v154_v56 = vld [vmem:[%s11683_s3 + $0x188] sm:$0xff]  ;;  %v1411_v57 = vld [vmem:[%s11685_s5 + $0x20] sm:$0xff] }
 0x14d   :  { %9481 = vmatprep.subr.bf16.mxu0 %v9898_v19  ;;  %9511 = vmatprep.subr.bf16.mxu1 %v9898_v19  ;;  %v9539_v59 = vpack.c.bf16 %v154_v56, %v153_v55  ;;  %v9569_v60 = vpack.c.bf16 %v1412_v58, %v1411_v57  ;;  %v1431_v55 = vld [vmem:[%s11685_s5 + $0xc0] sm:$0xff]  ;;  %v1432_v56 = vld [vmem:[%s11685_s5 + $0xc8] sm:$0xff] }
 0x14e   :  { %8682 = vmatprep.mubr.msk.f32.mxu0 %vm9899_vm1, %v9900_v27  ;;  %8737 = vmatprep.mubr.msk.f32.mxu1 %vm9899_vm1, %v9900_v27  ;;  %v1451_v57 = vld [vmem:[%s11685_s5 + $0x160] sm:$0xff]  ;;  %v1452_v58 = vld [vmem:[%s11685_s5 + $0x168] sm:$0xff] }
 0x150   :  { %9483 = vmatpush3.bf16.msra.mxu0 %v9482_v62  ;;  %9513 = vmatpush3.bf16.msra.mxu1 %v9512_v63  ;;  %v156_v62 = vld [vmem:[%s11683_s3 + $0x198] sm:$0xff]  ;;  %v1413_v63 = vld [vmem:[%s11685_s5 + $0x30] sm:$0xff] }
 0x151   :  { %9490 = vmatprep.subr.bf16.mxu0 %v9898_v19  ;;  %9520 = vmatprep.subr.bf16.mxu1 %v9898_v19  ;;  %v9542_v1 = vpack.c.bf16 %v156_v62, %v155_v61  ;;  %v9572_v2 = vpack.c.bf16 %v1414_v0, %v1413_v63  ;;  %v1433_v61 = vld [vmem:[%s11685_s5 + $0xd0] sm:$0xff]  ;;  %v1434_v62 = vld [vmem:[%s11685_s5 + $0xd8] sm:$0xff] }
 0x152   :  { %v1453_v63 = vld [vmem:[%s11685_s5 + $0x170] sm:$0xff]  ;;  %v1454_v0 = vld [vmem:[%s11685_s5 + $0x178] sm:$0xff] }
 0x153   :  { %8683 = vmatmul.mubr.msk.f32.vlgmr.msra.gmra.mrb[4].mxu0 %vm61_vm0, %v10069_v46  ;;  %8738 = vmatmul.mubr.msk.f32.vlgmr.msra.gmra.mrb[4].mxu1 %vm61_vm0, %v10069_v46 }
 0x154   :  { %9492 = vmatpush3.bf16.msra.mxu0 %v9491_v5  ;;  %9522 = vmatpush3.bf16.msra.mxu1 %v9521_v6  ;;  %v1419_v5 = vld [vmem:[%s11685_s5 + $0x60] sm:$0xff]  ;;  %v1420_v6 = vld [vmem:[%s11685_s5 + $0x68] sm:$0xff] }
 0x155   :  { %9493 = vmatprep.subr.bf16.mxu0 %v9898_v19  ;;  %9523 = vmatprep.subr.bf16.mxu1 %v9898_v19  ;;  %v9581_v8 = vpack.c.bf16 %v1420_v6, %v1419_v5  ;;  %v1459_v5 = vld [vmem:[%s11685_s5 + $0x1a0] sm:$0xff]  ;;  %v1460_v6 = vld [vmem:[%s11685_s5 + $0x1a8] sm:$0xff] }
 0x156   :  { %8704 = vmatprep.mubr.msk.f32.mxu0 %vm9899_vm1, %v9900_v27  ;;  %8759 = vmatprep.mubr.msk.f32.mxu1 %vm9899_vm1, %v9900_v27 }
 0x158   :  { %9495 = vmatpush3.bf16.msra.mxu0 %v9494_v10  ;;  %9525 = vmatpush3.bf16.msra.mxu1 %v9524_v13  ;;  %v1422_v10 = vld [vmem:[%s11685_s5 + $0x78] sm:$0xff]  ;;  %v9554_v13 = vpack.c.bf16 %v164_v11, %v163_v9  ;;  %v1441_v9 = vld [vmem:[%s11685_s5 + $0x110] sm:$0xff] }
 0x159   :  { %9502 = vmatprep.subr.bf16.mxu0 %v9898_v19  ;;  %9532 = vmatprep.subr.bf16.mxu1 %v9898_v19  ;;  %v9584_v14 = vpack.c.bf16 %v1422_v10, %v1421_v12  ;;  %v1442_v11 = vld [vmem:[%s11685_s5 + $0x118] sm:$0xff]  ;;  %v1461_v12 = vld [vmem:[%s11685_s5 + $0x1b0] sm:$0xff] }
 0x15a   :  { %v1462_v10 = vld [vmem:[%s11685_s5 + $0x1b8] sm:$0xff] }
 0x15b   :  { %8705 = vmatmul.mubr.msk.f32.vlgmr.msra.gmra.mrb[6].mxu0 %vm61_vm0, %v10069_v46  ;;  %8760 = vmatmul.mubr.msk.f32.vlgmr.msra.gmra.mrb[6].mxu1 %vm61_vm0, %v10180_v23 }
 0x15c   :  { %9504 = vmatpush3.bf16.msra.mxu0 %v9503_v20  ;;  %9534 = vmatpush3.bf16.msra.mxu1 %v9533_v21  ;;  %v9563_v20 = vpack.c.bf16 %v1408_v16, %v1407_v15  ;;  %v9593_v21 = vpack.c.bf16 %v1428_v18, %v1427_v17  ;;  %v1447_v15 = vld [vmem:[%s11685_s5 + $0x140] sm:$0xff]  ;;  %v1448_v16 = vld [vmem:[%s11685_s5 + $0x148] sm:$0xff] }
 0x15d   :  { %9505 = vmatprep.subr.bf16.mxu0 %v9898_v19  ;;  %9535 = vmatprep.subr.bf16.mxu1 %v9898_v19  ;;  %v1467_v17 = vld [vmem:[%s11685_s5 + $0x1e0] sm:$0xff]  ;;  %v1468_v18 = vld [vmem:[%s11685_s5 + $0x1e8] sm:$0xff] }
 0x15e   :  { %8726 = vmatprep.mubr.msk.f32.mxu0 %vm9899_vm1, %v9900_v27  ;;  %8781 = vmatprep.mubr.msk.f32.mxu1 %vm9899_vm1, %v9900_v27 }
 0x160   :  { %9507 = vmatpush3.bf16.msra.mxu0 %v9506_v28  ;;  %9537 = vmatpush3.bf16.msra.mxu1 %v9536_v29  ;;  %v9566_v28 = vpack.c.bf16 %v1410_v24, %v1409_v22  ;;  %v9596_v29 = vpack.c.bf16 %v1430_v26, %v1429_v25  ;;  %v1449_v22 = vld [vmem:[%s11685_s5 + $0x150] sm:$0xff]  ;;  %v1450_v24 = vld [vmem:[%s11685_s5 + $0x158] sm:$0xff] }
 0x161   :  { %9514 = vmatprep.subr.bf16.mxu0 %v9898_v19  ;;  %9544 = vmatprep.subr.bf16.mxu1 %v9898_v19  ;;  %v1469_v25 = vld [vmem:[%s11685_s5 + $0x1f0] sm:$0xff]  ;;  %v1470_v26 = vld [vmem:[%s11685_s5 + $0x1f8] sm:$0xff] }
 0x163   :  { %8727 = vmatmul.mubr.msk.f32.vlgmr.msra.gmra.mrb[8].mxu0 %vm61_vm0, %v10069_v46  ;;  %8782 = vmatmul.mubr.msk.f32.vlgmr.msra.gmra.mrb[8].mxu1 %vm61_vm0, %v10180_v23 }
 0x164   :  { %9516 = vmatpush3.bf16.msra.mxu0 %v9515_v34  ;;  %9546 = vmatpush3.bf16.msra.mxu1 %v9545_v35  ;;  %v9575_v34 = vpack.c.bf16 %v1416_v31, %v1415_v30  ;;  %v9605_v35 = vpack.c.bf16 %v1436_v33, %v1435_v32  ;;  %v1455_v30 = vld [vmem:[%s11685_s5 + $0x180] sm:$0xff]  ;;  %v1456_v31 = vld [vmem:[%s11685_s5 + $0x188] sm:$0xff] }
 0x165   :  { %9517 = vmatprep.subr.bf16.mxu0 %v9898_v19  ;;  %9547 = vmatprep.subr.bf16.mxu1 %v9898_v19  ;;  %v2707_v32 = vld [vmem:[%s11687_s7 + $0x20] sm:$0xff]  ;;  %v2708_v33 = vld [vmem:[%s11687_s7 + $0x28] sm:$0xff] }
 0x166   :  { %8748 = vmatprep.mubr.msk.f32.mxu0 %vm9899_vm1, %v9900_v27  ;;  %8803 = vmatprep.mubr.msk.f32.mxu1 %vm9899_vm1, %v9900_v27 }
 0x168   :  { %9519 = vmatpush3.bf16.msra.mxu0 %v9518_v40  ;;  %9549 = vmatpush3.bf16.msra.mxu1 %v9548_v41  ;;  %v9578_v40 = vpack.c.bf16 %v1418_v37, %v1417_v36  ;;  %v9608_v41 = vpack.c.bf16 %v1438_v39, %v1437_v38  ;;  %v1457_v36 = vld [vmem:[%s11685_s5 + $0x190] sm:$0xff]  ;;  %v1458_v37 = vld [vmem:[%s11685_s5 + $0x198] sm:$0xff] }
 0x169   :  { %9526 = vmatprep.subr.bf16.mxu0 %v9898_v19  ;;  %9556 = vmatprep.subr.bf16.mxu1 %v9898_v19  ;;  %v2709_v38 = vld [vmem:[%s11687_s7 + $0x30] sm:$0xff]  ;;  %v2710_v39 = vld [vmem:[%s11687_s7 + $0x38] sm:$0xff] }
 0x16b   :  { %8749 = vmatmul.mubr.msk.f32.vlgmr.msra.gmra.mrb[10].mxu0 %vm61_vm0, %v10180_v23  ;;  %8804 = vmatmul.mubr.msk.f32.vlgmr.msra.gmra.mrb[10].mxu1 %vm61_vm0, %v10180_v23 }
 0x16c   :  { %9528 = vmatpush3.bf16.msra.mxu0 %v9527_v47  ;;  %9558 = vmatpush3.bf16.msra.mxu1 %v9557_v48  ;;  %v9587_v47 = vpack.c.bf16 %v1424_v43, %v1423_v42  ;;  %v9617_v48 = vpack.c.bf16 %v1444_v45, %v1443_v44  ;;  %v1463_v42 = vld [vmem:[%s11685_s5 + $0x1c0] sm:$0xff]  ;;  %v1464_v43 = vld [vmem:[%s11685_s5 + $0x1c8] sm:$0xff] }
 0x16d   :  { %9529 = vmatprep.subr.bf16.mxu0 %v9898_v19  ;;  %9559 = vmatprep.subr.bf16.mxu1 %v9898_v19  ;;  %v2715_v44 = vld [vmem:[%s11687_s7 + $0x60] sm:$0xff]  ;;  %v2716_v45 = vld [vmem:[%s11687_s7 + $0x68] sm:$0xff] }
 0x16e   :  { %8770 = vmatprep.mubr.msk.f32.mxu0 %vm9899_vm1, %v9900_v27  ;;  %8825 = vmatprep.mubr.msk.f32.mxu1 %vm9899_vm1, %v9900_v27 }
 0x170   :  { %9531 = vmatpush3.bf16.msra.mxu0 %v9530_v53  ;;  %9561 = vmatpush3.bf16.msra.mxu1 %v9560_v54  ;;  %v9590_v53 = vpack.c.bf16 %v1426_v50, %v1425_v49  ;;  %v9620_v54 = vpack.c.bf16 %v1446_v52, %v1445_v51  ;;  %v1465_v49 = vld [vmem:[%s11685_s5 + $0x1d0] sm:$0xff]  ;;  %v1466_v50 = vld [vmem:[%s11685_s5 + $0x1d8] sm:$0xff] }
 0x171   :  { %9538 = vmatprep.subr.bf16.mxu0 %v9898_v19  ;;  %9568 = vmatprep.subr.bf16.mxu1 %v9898_v19  ;;  %v2717_v51 = vld [vmem:[%s11687_s7 + $0x70] sm:$0xff]  ;;  %v2718_v52 = vld [vmem:[%s11687_s7 + $0x78] sm:$0xff] }
 0x173   :  { %8771 = vmatmul.mubr.msk.f32.vlgmr.msra.gmra.mrb[12].mxu0 %vm61_vm0, %v10180_v23  ;;  %8826 = vmatmul.mubr.msk.f32.vlgmr.msra.gmra.mrb[12].mxu1 %vm61_vm0, %v10180_v23 }
 0x174   :  { %9540 = vmatpush3.bf16.msra.mxu0 %v9539_v59  ;;  %9570 = vmatpush3.bf16.msra.mxu1 %v9569_v60  ;;  %v9599_v59 = vpack.c.bf16 %v1432_v56, %v1431_v55  ;;  %v9629_v60 = vpack.c.bf16 %v1452_v58, %v1451_v57  ;;  %v2703_v55 = vld [vmem:[%s11687_s7] sm:$0xff]  ;;  %v2704_v56 = vld [vmem:[%s11687_s7 + $0x8] sm:$0xff] }
 0x175   :  { %9541 = vmatprep.subr.bf16.mxu0 %v9898_v19  ;;  %9571 = vmatprep.subr.bf16.mxu1 %v9898_v19  ;;  %v2723_v57 = vld [vmem:[%s11687_s7 + $0xa0] sm:$0xff]  ;;  %v2724_v58 = vld [vmem:[%s11687_s7 + $0xa8] sm:$0xff] }
 0x176   :  { %8792 = vmatprep.mubr.msk.f32.mxu0 %vm9899_vm1, %v9900_v27  ;;  %8847 = vmatprep.mubr.msk.f32.mxu1 %vm9899_vm1, %v9900_v27 }
 0x178   :  { %9543 = vmatpush3.bf16.msra.mxu0 %v9542_v1  ;;  %9573 = vmatpush3.bf16.msra.mxu1 %v9572_v2  ;;  %v9602_v1 = vpack.c.bf16 %v1434_v62, %v1433_v61  ;;  %v9632_v2 = vpack.c.bf16 %v1454_v0, %v1453_v63  ;;  %v2705_v61 = vld [vmem:[%s11687_s7 + $0x10] sm:$0xff]  ;;  %v2706_v62 = vld [vmem:[%s11687_s7 + $0x18] sm:$0xff] }
 0x179   :  { %9550 = vmatprep.subr.bf16.mxu0 %v9898_v19  ;;  %9580 = vmatprep.subr.bf16.mxu1 %v9898_v19  ;;  %v2725_v63 = vld [vmem:[%s11687_s7 + $0xb0] sm:$0xff]  ;;  %v2726_v0 = vld [vmem:[%s11687_s7 + $0xb8] sm:$0xff] }
 0x17b   :  { %8793 = vmatmul.mubr.msk.f32.vlgmr.msra.gmra.mrb[14].mxu0 %vm61_vm0, %v10180_v23  ;;  %8848 = vmatmul.mubr.msk.f32.vlgmr.msra.gmra.mrb[14].mxu1 %vm61_vm0, %v10069_v46 }
 0x17c   :  { %9552 = vmatpush3.bf16.msra.mxu0 %v9551_v7  ;;  %9582 = vmatpush3.bf16.msra.mxu1 %v9581_v8  ;;  %v9611_v7 = vpack.c.bf16 %v1440_v4, %v1439_v3  ;;  %v9641_v8 = vpack.c.bf16 %v1460_v6, %v1459_v5  ;;  %v2711_v3 = vld [vmem:[%s11687_s7 + $0x40] sm:$0xff]  ;;  %v2712_v4 = vld [vmem:[%s11687_s7 + $0x48] sm:$0xff] }
 0x17d   :  { %9553 = vmatprep.subr.bf16.mxu0 %v9898_v19  ;;  %9583 = vmatprep.subr.bf16.mxu1 %v9898_v19  ;;  %v2731_v5 = vld [vmem:[%s11687_s7 + $0xe0] sm:$0xff]  ;;  %v2732_v6 = vld [vmem:[%s11687_s7 + $0xe8] sm:$0xff] }
 0x17e   :  { %8814 = vmatprep.mubr.msk.f32.mxu0 %vm9899_vm1, %v9900_v27  ;;  %8869 = vmatprep.mubr.msk.f32.mxu1 %vm9899_vm1, %v9900_v27 }
 0x180   :  { %9555 = vmatpush3.bf16.msra.mxu0 %v9554_v13  ;;  %9585 = vmatpush3.bf16.msra.mxu1 %v9584_v14  ;;  %v9614_v13 = vpack.c.bf16 %v1442_v11, %v1441_v9  ;;  %v9644_v14 = vpack.c.bf16 %v1462_v10, %v1461_v12  ;;  %v2713_v9 = vld [vmem:[%s11687_s7 + $0x50] sm:$0xff]  ;;  %v2714_v11 = vld [vmem:[%s11687_s7 + $0x58] sm:$0xff] }
 0x181   :  { %9562 = vmatprep.subr.bf16.mxu0 %v9898_v19  ;;  %9592 = vmatprep.subr.bf16.mxu1 %v9898_v19  ;;  %v2733_v12 = vld [vmem:[%s11687_s7 + $0xf0] sm:$0xff]  ;;  %v2734_v10 = vld [vmem:[%s11687_s7 + $0xf8] sm:$0xff] }
 0x183   :  { %8815 = vmatmul.mubr.msk.f32.vlgmr.msra.gmra.mrb[16].mxu0 %vm61_vm0, %v10180_v23  ;;  %8870 = vmatmul.mubr.msk.f32.vlgmr.msra.gmra.mrb[16].mxu1 %vm61_vm0, %v10069_v46 }
 0x184   :  { %9564 = vmatpush3.bf16.msra.mxu0 %v9563_v20  ;;  %9594 = vmatpush3.bf16.msra.mxu1 %v9593_v21  ;;  %v9623_v20 = vpack.c.bf16 %v1448_v16, %v1447_v15  ;;  %v9653_v21 = vpack.c.bf16 %v1468_v18, %v1467_v17  ;;  %v2719_v15 = vld [vmem:[%s11687_s7 + $0x80] sm:$0xff]  ;;  %v2720_v16 = vld [vmem:[%s11687_s7 + $0x88] sm:$0xff] }
 0x185   :  { %9565 = vmatprep.subr.bf16.mxu0 %v9898_v19  ;;  %9595 = vmatprep.subr.bf16.mxu1 %v9898_v19  ;;  %v2739_v17 = vld [vmem:[%s11687_s7 + $0x120] sm:$0xff]  ;;  %v2740_v18 = vld [vmem:[%s11687_s7 + $0x128] sm:$0xff] }
 0x186   :  { %8836 = vmatprep.mubr.msk.f32.mxu0 %vm9899_vm1, %v9900_v27  ;;  %8891 = vmatprep.mubr.msk.f32.mxu1 %vm9899_vm1, %v9900_v27 }
 0x188   :  { %9567 = vmatpush3.bf16.msra.mxu0 %v9566_v28  ;;  %9597 = vmatpush3.bf16.msra.mxu1 %v9596_v29  ;;  %v9626_v28 = vpack.c.bf16 %v1450_v24, %v1449_v22  ;;  %v9656_v29 = vpack.c.bf16 %v1470_v26, %v1469_v25  ;;  %v2721_v22 = vld [vmem:[%s11687_s7 + $0x90] sm:$0xff]  ;;  %v2722_v24 = vld [vmem:[%s11687_s7 + $0x98] sm:$0xff] }
 0x189   :  { %9574 = vmatprep.subr.bf16.mxu0 %v9898_v19  ;;  %9604 = vmatprep.subr.bf16.mxu1 %v9898_v19  ;;  %v2741_v25 = vld [vmem:[%s11687_s7 + $0x130] sm:$0xff]  ;;  %v2742_v26 = vld [vmem:[%s11687_s7 + $0x138] sm:$0xff] }
 0x18b   :  { %8837 = vmatmul.mubr.msk.f32.vlgmr.msra.gmra.mrb[18].mxu0 %vm61_vm0, %v10069_v46  ;;  %8892 = vmatmul.mubr.msk.f32.vlgmr.msra.gmra.mrb[18].mxu1 %vm61_vm0, %v10069_v46 }
 0x18c   :  { %9576 = vmatpush3.bf16.msra.mxu0 %v9575_v34  ;;  %9606 = vmatpush3.bf16.msra.mxu1 %v9605_v35  ;;  %v9635_v34 = vpack.c.bf16 %v1456_v31, %v1455_v30  ;;  %v9665_v35 = vpack.c.bf16 %v2708_v33, %v2707_v32  ;;  %v2727_v30 = vld [vmem:[%s11687_s7 + $0xc0] sm:$0xff]  ;;  %v2728_v31 = vld [vmem:[%s11687_s7 + $0xc8] sm:$0xff] }
 0x18d   :  { %9577 = vmatprep.subr.bf16.mxu0 %v9898_v19  ;;  %9607 = vmatprep.subr.bf16.mxu1 %v9898_v19  ;;  %v2747_v32 = vld [vmem:[%s11687_s7 + $0x160] sm:$0xff]  ;;  %v2748_v33 = vld [vmem:[%s11687_s7 + $0x168] sm:$0xff] }
 0x18e   :  { %8858 = vmatprep.mubr.msk.f32.mxu0 %vm9899_vm1, %v9900_v27  ;;  %8913 = vmatprep.mubr.msk.f32.mxu1 %vm9899_vm1, %v9900_v27 }
 0x190   :  { %9579 = vmatpush3.bf16.msra.mxu0 %v9578_v40  ;;  %9609 = vmatpush3.bf16.msra.mxu1 %v9608_v41  ;;  %v9638_v40 = vpack.c.bf16 %v1458_v37, %v1457_v36  ;;  %v9668_v41 = vpack.c.bf16 %v2710_v39, %v2709_v38  ;;  %v2729_v36 = vld [vmem:[%s11687_s7 + $0xd0] sm:$0xff]  ;;  %v2730_v37 = vld [vmem:[%s11687_s7 + $0xd8] sm:$0xff] }
 0x191   :  { %9586 = vmatprep.subr.bf16.mxu0 %v9898_v19  ;;  %9616 = vmatprep.subr.bf16.mxu1 %v9898_v19  ;;  %v2749_v38 = vld [vmem:[%s11687_s7 + $0x170] sm:$0xff]  ;;  %v2750_v39 = vld [vmem:[%s11687_s7 + $0x178] sm:$0xff] }
 0x193   :  { %8859 = vmatmul.mubr.msk.f32.vlgmr.msra.gmra.mrb[20].mxu0 %vm61_vm0, %v10069_v46  ;;  %8914 = vmatmul.mubr.msk.f32.vlgmr.msra.gmra.mrb[20].mxu1 %vm61_vm0, %v10069_v46 }
 0x194   :  { %9588 = vmatpush3.bf16.msra.mxu0 %v9587_v47  ;;  %9618 = vmatpush3.bf16.msra.mxu1 %v9617_v48  ;;  %v9647_v47 = vpack.c.bf16 %v1464_v43, %v1463_v42  ;;  %v9677_v48 = vpack.c.bf16 %v2716_v45, %v2715_v44  ;;  %v2735_v42 = vld [vmem:[%s11687_s7 + $0x100] sm:$0xff]  ;;  %v2736_v43 = vld [vmem:[%s11687_s7 + $0x108] sm:$0xff] }
 0x195   :  { %9589 = vmatprep.subr.bf16.mxu0 %v9898_v19  ;;  %9619 = vmatprep.subr.bf16.mxu1 %v9898_v19  ;;  %v2755_v44 = vld [vmem:[%s11687_s7 + $0x1a0] sm:$0xff]  ;;  %v2756_v45 = vld [vmem:[%s11687_s7 + $0x1a8] sm:$0xff] }
 0x196   :  { %8880 = vmatprep.mubr.msk.f32.mxu0 %vm9899_vm1, %v9900_v27  ;;  %8935 = vmatprep.mubr.msk.f32.mxu1 %vm9899_vm1, %v9900_v27 }
 0x198   :  { %9591 = vmatpush3.bf16.msra.mxu0 %v9590_v53  ;;  %9621 = vmatpush3.bf16.msra.mxu1 %v9620_v54  ;;  %v9650_v53 = vpack.c.bf16 %v1466_v50, %v1465_v49  ;;  %v9680_v54 = vpack.c.bf16 %v2718_v52, %v2717_v51  ;;  %v2737_v49 = vld [vmem:[%s11687_s7 + $0x110] sm:$0xff]  ;;  %v2738_v50 = vld [vmem:[%s11687_s7 + $0x118] sm:$0xff] }
 0x199   :  { %9598 = vmatprep.subr.bf16.mxu0 %v9898_v19  ;;  %9628 = vmatprep.subr.bf16.mxu1 %v9898_v19  ;;  %v2757_v51 = vld [vmem:[%s11687_s7 + $0x1b0] sm:$0xff]  ;;  %v2758_v52 = vld [vmem:[%s11687_s7 + $0x1b8] sm:$0xff] }
 0x19b   :  { %8881 = vmatmul.mubr.msk.f32.vlgmr.msra.gmra.mrb[22].mxu0 %vm61_vm0, %v10069_v46  ;;  %8936 = vmatmul.mubr.msk.f32.vlgmr.msra.gmra.mrb[22].mxu1 %vm61_vm0, %v10180_v23 }
 0x19c   :  { %9600 = vmatpush3.bf16.msra.mxu0 %v9599_v59  ;;  %9630 = vmatpush3.bf16.msra.mxu1 %v9629_v60  ;;  %v9659_v59 = vpack.c.bf16 %v2704_v56, %v2703_v55  ;;  %v9689_v60 = vpack.c.bf16 %v2724_v58, %v2723_v57  ;;  %v2743_v55 = vld [vmem:[%s11687_s7 + $0x140] sm:$0xff]  ;;  %v2744_v56 = vld [vmem:[%s11687_s7 + $0x148] sm:$0xff] }
 0x19d   :  { %9601 = vmatprep.subr.bf16.mxu0 %v9898_v19  ;;  %9631 = vmatprep.subr.bf16.mxu1 %v9898_v19  ;;  %v2764_v57 = vld [vmem:[%s11687_s7 + $0x1e8] sm:$0xff]  ;;  %v9719_v58 = vpack.c.bf16 %v2744_v56, %v2743_v55  ;;  %v8141_v56 = vld [vmem:[%s11686_s6] ss:$0 sm:$0xff] }
 0x19e   :  { %8902 = vmatprep.mubr.msk.f32.mxu0 %vm9899_vm1, %v9900_v27  ;;  %8957 = vmatprep.mubr.msk.f32.mxu1 %vm9899_vm1, %v9900_v27 }
 0x1a0   :  { %9603 = vmatpush3.bf16.msra.mxu0 %v9602_v1  ;;  %9633 = vmatpush3.bf16.msra.mxu1 %v9632_v2  ;;  %v9662_v1 = vpack.c.bf16 %v2706_v62, %v2705_v61  ;;  %v9692_v2 = vpack.c.bf16 %v2726_v0, %v2725_v63  ;;  %v2746_v61 = vld [vmem:[%s11687_s7 + $0x158] sm:$0xff]  ;;  %v2765_v62 = vld [vmem:[%s11687_s7 + $0x1f0] sm:$0xff] }
 0x1a1   :  { %9610 = vmatprep.subr.bf16.mxu0 %v9898_v19  ;;  %9640 = vmatprep.subr.bf16.mxu1 %v9898_v19  ;;  %v2766_v63 = vld [vmem:[%s11687_s7 + $0x1f8] sm:$0xff] }
 0x1a3   :  { %8903 = vmatmul.mubr.msk.f32.vlgmr.msra.gmra.mrb[24].mxu0 %vm61_vm0, %v10069_v46  ;;  %8958 = vmatmul.mubr.msk.f32.vlgmr.msra.gmra.mrb[24].mxu1 %vm61_vm0, %v10180_v23 }
 0x1a4   :  { %9612 = vmatpush3.bf16.msra.mxu0 %v9611_v7  ;;  %9642 = vmatpush3.bf16.msra.mxu1 %v9641_v8  ;;  %v9671_v7 = vpack.c.bf16 %v2712_v4, %v2711_v3  ;;  %v9701_v8 = vpack.c.bf16 %v2732_v6, %v2731_v5  ;;  %v2752_v3 = vld [vmem:[%s11687_s7 + $0x188] sm:$0xff]  ;;  %v2753_v5 = vld [vmem:[%s11687_s7 + $0x190] sm:$0xff]  ;;  %v2754_v6 = vld [vmem:[%s11687_s7 + $0x198] sm:$0xff] }
 0x1a5   :  { %9613 = vmatprep.subr.bf16.mxu0 %v9898_v19  ;;  %9643 = vmatprep.subr.bf16.mxu1 %v9898_v19 }
 0x1a6   :  { %8924 = vmatprep.mubr.msk.f32.mxu0 %vm9899_vm1, %v9900_v27  ;;  %8979 = vmatprep.mubr.msk.f32.mxu1 %vm9899_vm1, %v9900_v27 }
 0x1a8   :  { %9615 = vmatpush3.bf16.msra.mxu0 %v9614_v13  ;;  %9645 = vmatpush3.bf16.msra.mxu1 %v9644_v14  ;;  %v9674_v13 = vpack.c.bf16 %v2714_v11, %v2713_v9  ;;  %v9704_v14 = vpack.c.bf16 %v2734_v10, %v2733_v12  ;;  %v2760_v9 = vld [vmem:[%s11687_s7 + $0x1c8] sm:$0xff]  ;;  %v2761_v12 = vld [vmem:[%s11687_s7 + $0x1d0] sm:$0xff]  ;;  %v2762_v10 = vld [vmem:[%s11687_s7 + $0x1d8] sm:$0xff] }
 0x1a9   :  { %9622 = vmatprep.subr.bf16.mxu0 %v9898_v19  ;;  %9652 = vmatprep.subr.bf16.mxu1 %v9898_v19 }
 0x1ab   :  { %8925 = vmatmul.mubr.msk.f32.vlgmr.msra.gmra.mrb[26].mxu0 %vm61_vm0, %v10180_v23  ;;  %8980 = vmatmul.mubr.msk.f32.vlgmr.msra.gmra.mrb[26].mxu1 %vm61_vm0, %v10180_v23 }
 0x1ac   :  { %9624 = vmatpush3.bf16.msra.mxu0 %v9623_v20  ;;  %9654 = vmatpush3.bf16.msra.mxu1 %v9653_v21  ;;  %v9683_v20 = vpack.c.bf16 %v2720_v16, %v2719_v15  ;;  %v9713_v21 = vpack.c.bf16 %v2740_v18, %v2739_v17 }
 0x1ad   :  { %9625 = vmatprep.subr.bf16.mxu0 %v9898_v19  ;;  %9655 = vmatprep.subr.bf16.mxu1 %v9898_v19 }
 0x1ae   :  { %8946 = vmatprep.mubr.msk.f32.mxu0 %vm9899_vm1, %v9900_v27  ;;  %9001 = vmatprep.mubr.msk.f32.mxu1 %vm9899_vm1, %v9900_v27 }
 0x1b0   :  { %9627 = vmatpush3.bf16.msra.mxu0 %v9626_v28  ;;  %9657 = vmatpush3.bf16.msra.mxu1 %v9656_v29  ;;  %v9686_v28 = vpack.c.bf16 %v2722_v24, %v2721_v22  ;;  %v9716_v29 = vpack.c.bf16 %v2742_v26, %v2741_v25 }
 0x1b1   :  { %9634 = vmatprep.subr.bf16.mxu0 %v9898_v19  ;;  %9664 = vmatprep.subr.bf16.mxu1 %v9898_v19 }
 0x1b3   :  { %8947 = vmatmul.mubr.msk.f32.vlgmr.msra.gmra.mrb[28].mxu0 %vm61_vm0, %v10180_v23  ;;  %9002 = vmatmul.mubr.msk.f32.vlgmr.msra.gmra.mrb[28].mxu1 %vm61_vm0, %v10180_v23 }
 0x1b4   :  { %9636 = vmatpush3.bf16.msra.mxu0 %v9635_v34  ;;  %9666 = vmatpush3.bf16.msra.mxu1 %v9665_v35  ;;  %v9695_v34 = vpack.c.bf16 %v2728_v31, %v2727_v30  ;;  %v9725_v35 = vpack.c.bf16 %v2748_v33, %v2747_v32 }
 0x1b5   :  { %9637 = vmatprep.subr.bf16.mxu0 %v9898_v19  ;;  %9667 = vmatprep.subr.bf16.mxu1 %v9898_v19 }
 0x1b6   :  { %8968 = vmatprep.mubr.msk.f32.mxu0 %vm9899_vm1, %v9900_v27  ;;  %9023 = vmatprep.mubr.msk.f32.mxu1 %vm9899_vm1, %v9900_v27 }
 0x1b8   :  { %9639 = vmatpush3.bf16.msra.mxu0 %v9638_v40  ;;  %9669 = vmatpush3.bf16.msra.mxu1 %v9668_v41  ;;  %v9698_v40 = vpack.c.bf16 %v2730_v37, %v2729_v36  ;;  %v9728_v41 = vpack.c.bf16 %v2750_v39, %v2749_v38 }
 0x1b9   :  { %9646 = vmatprep.subr.bf16.mxu0 %v9898_v19  ;;  %9676 = vmatprep.subr.bf16.mxu1 %v9898_v19 }
 0x1bb   :  { %8969 = vmatmul.mubr.msk.f32.vlgmr.msra.gmra.mrb[30].mxu0 %vm61_vm0, %v10180_v23  ;;  %9024 = vmatmul.mubr.msk.f32.vlgmr.msra.gmra.mrb[30].mxu1 %vm61_vm0, %v10069_v46 }
 0x1bc   :  { %9648 = vmatpush3.bf16.msra.mxu0 %v9647_v47  ;;  %9678 = vmatpush3.bf16.msra.mxu1 %v9677_v48  ;;  %v9707_v47 = vpack.c.bf16 %v2736_v43, %v2735_v42  ;;  %v9737_v48 = vpack.c.bf16 %v2756_v45, %v2755_v44 }
 0x1bd   :  { %9649 = vmatprep.subr.bf16.mxu0 %v9898_v19  ;;  %9679 = vmatprep.subr.bf16.mxu1 %v9898_v19 }
 0x1be   :  { %8990 = vmatprep.mubr.msk.f32.mxu0 %vm9899_vm1, %v9900_v27  ;;  %9045 = vmatprep.mubr.msk.f32.mxu1 %vm9899_vm1, %v9900_v27 }
 0x1c0   :  { %9651 = vmatpush3.bf16.msra.mxu0 %v9650_v53  ;;  %9681 = vmatpush3.bf16.msra.mxu1 %v9680_v54  ;;  %v9710_v53 = vpack.c.bf16 %v2738_v50, %v2737_v49  ;;  %v9740_v54 = vpack.c.bf16 %v2758_v52, %v2757_v51  ;;  %v8112_v51 = vld [vmem:[%s11684_s4 + $0x3] ss:$0 sm:$0xff] }
 0x1c1   :  { %9658 = vmatprep.subr.bf16.mxu0 %v9898_v19  ;;  %9688 = vmatprep.subr.bf16.mxu1 %v9898_v19 }
 0x1c3   :  { %8991 = vmatmul.mubr.msk.f32.vlgmr.msra.gmra.mrb[32].mxu0 %vm61_vm0, %v10180_v23  ;;  %9046 = vmatmul.mubr.msk.f32.vlgmr.msra.gmra.mrb[32].mxu1 %vm61_vm0, %v10069_v46 }
 0x1c4   :  { %9660 = vmatpush3.bf16.msra.mxu0 %v9659_v59  ;;  %9690 = vmatpush3.bf16.msra.mxu1 %v9689_v60  ;;  %v2745_v60 = vld [vmem:[%s11687_s7 + $0x150] sm:$0xff] }
 0x1c5   :  { %9661 = vmatprep.subr.bf16.mxu0 %v9898_v19  ;;  %9691 = vmatprep.subr.bf16.mxu1 %v9898_v19  ;;  %v9722_v0 = vpack.c.bf16 %v2746_v61, %v2745_v60  ;;  %v8114_v60 = vld [vmem:[%s11684_s4 + $0x5] ss:$0 sm:$0xff] }
 0x1c6   :  { %9012 = vmatprep.mubr.msk.f32.mxu0 %vm9899_vm1, %v9900_v27  ;;  %9067 = vmatprep.mubr.msk.f32.mxu1 %vm9899_vm1, %v9900_v27 }
 0x1c8   :  { %9663 = vmatpush3.bf16.msra.mxu0 %v9662_v1  ;;  %9693 = vmatpush3.bf16.msra.mxu1 %v9692_v2  ;;  %v9752_v1 = vpack.c.bf16 %v2766_v63, %v2765_v62  ;;  %v2751_v2 = vld [vmem:[%s11687_s7 + $0x180] sm:$0xff] }
 0x1c9   :  { %9670 = vmatprep.subr.bf16.mxu0 %v9898_v19  ;;  %9700 = vmatprep.subr.bf16.mxu1 %v9898_v19  ;;  %v9731_v4 = vpack.c.bf16 %v2752_v3, %v2751_v2 }
 0x1cb   :  { %9013 = vmatmul.mubr.msk.f32.vlgmr.msra.gmra.mrb[34].mxu0 %vm61_vm0, %v10069_v46  ;;  %9068 = vmatmul.mubr.msk.f32.vlgmr.msra.gmra.mrb[34].mxu1 %vm61_vm0, %v10069_v46 }
 0x1cc   :  { %9672 = vmatpush3.bf16.msra.mxu0 %v9671_v7  ;;  %9702 = vmatpush3.bf16.msra.mxu1 %v9701_v8  ;;  %v9734_v7 = vpack.c.bf16 %v2754_v6, %v2753_v5  ;;  %v2759_v8 = vld [vmem:[%s11687_s7 + $0x1c0] sm:$0xff] }
 0x1cd   :  { %9673 = vmatprep.subr.bf16.mxu0 %v9898_v19  ;;  %9703 = vmatprep.subr.bf16.mxu1 %v9898_v19  ;;  %v9743_v11 = vpack.c.bf16 %v2760_v9, %v2759_v8  ;;  %v8143_v6 = vld [vmem:[%s11686_s6 + $0x2] ss:$0 sm:$0xff] }
 0x1ce   :  { %9034 = vmatprep.mubr.msk.f32.mxu0 %vm9899_vm1, %v9900_v27  ;;  %9089 = vmatprep.mubr.msk.f32.mxu1 %vm9899_vm1, %v9900_v27 }
 0x1d0   :  { %9675 = vmatpush3.bf16.msra.mxu0 %v9674_v13  ;;  %9705 = vmatpush3.bf16.msra.mxu1 %v9704_v14  ;;  %v9746_v13 = vpack.c.bf16 %v2762_v10, %v2761_v12  ;;  %v8111_v12 = vld [vmem:[%s11684_s4 + $0x2] ss:$0 sm:$0xff]  ;;  %v8116_v10 = vld [vmem:[%s11684_s4 + $0x7] ss:$0 sm:$0xff] }
 0x1d1   :  { %9682 = vmatprep.subr.bf16.mxu0 %v9898_v19  ;;  %9712 = vmatprep.subr.bf16.mxu1 %v9898_v19 }
 0x1d3   :  { %9035 = vmatmul.mubr.msk.f32.vlgmr.msra.gmra.mrb[36].mxu0 %vm61_vm0, %v10069_v46  ;;  %9090 = vmatmul.mubr.msk.f32.vlgmr.msra.gmra.mrb[36].mxu1 %vm61_vm0, %v10069_v46 }
 0x1d4   :  { %9684 = vmatpush3.bf16.msra.mxu0 %v9683_v20  ;;  %9714 = vmatpush3.bf16.msra.mxu1 %v9713_v21 }
 0x1d5   :  { %9685 = vmatprep.subr.bf16.mxu0 %v9898_v19  ;;  %9715 = vmatprep.subr.bf16.mxu1 %v9898_v19 }
 0x1d6   :  { %9056 = vmatprep.mubr.msk.f32.mxu0 %vm9899_vm1, %v9900_v27  ;;  %9111 = vmatprep.mubr.msk.f32.mxu1 %vm9899_vm1, %v9900_v27 }
 0x1d8   :  { %9687 = vmatpush3.bf16.msra.mxu0 %v9686_v28  ;;  %9717 = vmatpush3.bf16.msra.mxu1 %v9716_v29 }
 0x1d9   :  { %9694 = vmatprep.subr.bf16.mxu0 %v9898_v19  ;;  %9724 = vmatprep.subr.bf16.mxu1 %v9898_v19 }
 0x1db   :  { %9057 = vmatmul.mubr.msk.f32.vlgmr.msra.gmra.mrb[38].mxu0 %vm61_vm0, %v10069_v46  ;;  %9112 = vmatmul.mubr.msk.f32.vlgmr.msra.gmra.mrb[38].mxu1 %vm61_vm0, %v10180_v23 }
 0x1dc   :  { %9696 = vmatpush3.bf16.msra.mxu0 %v9695_v34  ;;  %9726 = vmatpush3.bf16.msra.mxu1 %v9725_v35 }
 0x1dd   :  { %9697 = vmatprep.subr.bf16.mxu0 %v9898_v19  ;;  %9727 = vmatprep.subr.bf16.mxu1 %v9898_v19 }
 0x1de   :  { %9078 = vmatprep.mubr.msk.f32.mxu0 %vm9899_vm1, %v9900_v27  ;;  %9133 = vmatprep.mubr.msk.f32.mxu1 %vm9899_vm1, %v9900_v27 }
 0x1e0   :  { %9699 = vmatpush3.bf16.msra.mxu0 %v9698_v40  ;;  %9729 = vmatpush3.bf16.msra.mxu1 %v9728_v41 }
 0x1e1   :  { %9706 = vmatprep.subr.bf16.mxu0 %v9898_v19  ;;  %9736 = vmatprep.subr.bf16.mxu1 %v9898_v19 }
 0x1e3   :  { %9079 = vmatmul.mubr.msk.f32.vlgmr.msra.gmra.mrb[40].mxu0 %vm61_vm0, %v10069_v46  ;;  %9134 = vmatmul.mubr.msk.f32.vlgmr.msra.gmra.mrb[40].mxu1 %vm61_vm0, %v10180_v23  ;;  %v2763_v46 = vld [vmem:[%s11687_s7 + $0x1e0] sm:$0xff] }
 0x1e4   :  { %9708 = vmatpush3.bf16.msra.mxu0 %v9707_v47  ;;  %9738 = vmatpush3.bf16.msra.mxu1 %v9737_v48  ;;  %v9749_v59 = vpack.c.bf16 %v2764_v57, %v2763_v46  ;;  %v8144_v48 = vld [vmem:[%s11686_s6 + $0x3] ss:$0 sm:$0xff]  ;;  %v8146_v46 = vld [vmem:[%s11686_s6 + $0x5] ss:$0 sm:$0xff] }
 0x1e5   :  { %9709 = vmatprep.subr.bf16.mxu0 %v9898_v19  ;;  %9739 = vmatprep.subr.bf16.mxu1 %v9898_v19 }
 0x1e6   :  { %9100 = vmatprep.mubr.msk.f32.mxu0 %vm9899_vm1, %v9900_v27  ;;  %9155 = vmatprep.mubr.msk.f32.mxu1 %vm9899_vm1, %v9900_v27 }
 0x1e8   :  { %9711 = vmatpush3.bf16.msra.mxu0 %v9710_v53  ;;  %9741 = vmatpush3.bf16.msra.mxu1 %v9740_v54 }
 0x1e9   :  { %9718 = vmatprep.subr.bf16.mxu0 %v9898_v19  ;;  %9748 = vmatprep.subr.bf16.mxu1 %v9898_v19 }
 0x1eb   :  { %9101 = vmatmul.mubr.msk.f32.vlgmr.msra.gmra.mrb[42].mxu0 %vm61_vm0, %v10180_v23  ;;  %9156 = vmatmul.mubr.msk.f32.vlgmr.msra.gmra.mrb[42].mxu1 %vm61_vm0, %v10180_v23 }
 0x1ec   :  { %9720 = vmatpush3.bf16.msra.mxu0 %v9719_v58  ;;  %9750 = vmatpush3.bf16.msra.mxu1 %v9749_v59  ;;  %v8109_v59 = vld [vmem:[%s11684_s4] ss:$0 sm:$0xff] }
 0x1ed   :  { %9721 = vmatprep.subr.bf16.mxu0 %v9898_v19  ;;  %9751 = vmatprep.subr.bf16.mxu1 %v9898_v19 }
 0x1ee   :  { %9122 = vmatprep.mubr.msk.f32.mxu0 %vm9899_vm1, %v9900_v27  ;;  %9177 = vmatprep.mubr.msk.f32.mxu1 %vm9899_vm1, %v9900_v27 }
 0x1f0   :  { %9723 = vmatpush3.bf16.msra.mxu0 %v9722_v0  ;;  %9753 = vmatpush3.bf16.msra.mxu1 %v9752_v1  ;;  %v8142_v1 = vld [vmem:[%s11686_s6 + $0x1] ss:$0 sm:$0xff] }
 0x1f1   :  { %9730 = vmatprep.subr.bf16.mxu0 %v9898_v19  ;;  %9195 = vmatprep.subr.mxu1 %v9900_v27 }
 0x1f3   :  { %9123 = vmatmul.mubr.msk.f32.vlgmr.msra.gmra.mrb[44].mxu0 %vm61_vm0, %v10180_v23  ;;  %9178 = vmatmul.mubr.msk.f32.vlgmr.msra.gmra.mrb[44].mxu1 %vm61_vm0, %v10180_v23 }
 0x1f4   :  { %9732 = vmatpush3.bf16.msra.mxu0 %v9731_v4  ;;  %9144 = vmatprep.mubr.msk.f32.mxu0 %vm9899_vm1, %v9900_v27  ;;  %v8110_v4 = vld [vmem:[%s11684_s4 + $0x1] ss:$0 sm:$0xff] }
 0x1f5   :  { %9733 = vmatprep.subr.bf16.mxu0 %v9898_v19  ;;  %9197 = vmatprep.mubr.msk.f32.mxu1 %vm9899_vm1, %v9900_v27 }
 0x1f8   :  { %9735 = vmatpush3.bf16.msra.mxu0 %v9734_v7  ;;  %v8148_v7 = vld [vmem:[%s11686_s6 + $0x7] ss:$0 sm:$0xff] }
 0x1f9   :  { %9742 = vmatprep.subr.bf16.mxu0 %v9898_v19 }
 0x1fb   :  { %9145 = vmatmul.mubr.msk.f32.vlgmr.msra.gmra.mrb[46].mxu0 %vm61_vm0, %v10180_v23 }
 0x1fc   :  { %9744 = vmatpush3.bf16.msra.mxu0 %v9743_v11  ;;  %9166 = vmatprep.mubr.msk.f32.mxu0 %vm9899_vm1, %v9900_v27 }
 0x1fd   :  { %9745 = vmatprep.subr.bf16.mxu0 %v9898_v19 }
 0x200   :  { %9747 = vmatpush3.bf16.msra.mxu0 %v9746_v13 }
 0x201   :  { %9180 = vmatprep.subr.mxu0 %v9900_v27 }
 0x203   :  { %9167 = vmatmul.mubr.msk.f32.vlgmr.msra.gmra.mrb[48].mxu0 %vm61_vm0, %v10180_v23 }
 0x204   :  { %9182 = vmatprep.mubr.msk.f32.mxu0 %vm9899_vm1, %v9900_v27 }
 0x216   :  { %v350_v14 = vpop.f32.mrb[0].mxu0  ;;  %v560_v15 = vpop.f32.mrb[0].mxu1 }
 0x217   :  { %v8662_v16 = vpop.f32.mrb[1].mxu0  ;;  %v8695_v17 = vpop.f32.mrb[1].mxu1  ;;  %v561_v55 = vadd.f32 %v8112_v51, %v560_v15  ;;  %v351_v2 = vadd.f32 %v8109_v59, %v350_v14 }
 0x21e   :  { %v10897_v18 = vpop.f32.mrb[2].mxu0  ;;  %v700_v20 = vpop.f32.mrb[2].mxu1 }
 0x21f   :  { %v8673_v21 = vpop.f32.mrb[3].mxu0  ;;  %v8717_v22 = vpop.f32.mrb[3].mxu1  ;;  %v701_v3 = vadd.f32 %v8114_v60, %v700_v20  ;;  %v421_v8 = vadd.f32 %v8110_v4, %v10897_v18  ;;  %v8145_v20 = vld [vmem:[%s11686_s6 + $0x4] ss:$0 sm:$0xff] }
 0x220   :  { %v8150_v21 = vld [vmem:[%s11686_s6 + $0x9] ss:$0 sm:$0xff] }
 0x226   :  { %v10899_v24 = vpop.f32.mrb[4].mxu0  ;;  %v10901_v19 = vpop.f32.mrb[4].mxu1 }
 0x227   :  { %v8684_v25 = vpop.f32.mrb[5].mxu0  ;;  %v8739_v26 = vpop.f32.mrb[5].mxu1  ;;  %v491_v17 = vadd.f32 %v8111_v12, %v10899_v24  ;;  %v841_v18 = vadd.f32 %v8116_v10, %v10901_v19  ;;  %v8113_v19 = vld [vmem:[%s11684_s4 + $0x4] ss:$0 sm:$0xff] }
 0x228   :  { %v8118_v25 = vld [vmem:[%s11684_s4 + $0x9] ss:$0 sm:$0xff] }
 0x22e   :  { %v10903_v28 = vpop.f32.mrb[6].mxu0  ;;  %v10905_v23 = vpop.f32.mrb[6].mxu1 }
 0x22f   :  { %v8706_v29 = vpop.f32.mrb[7].mxu0  ;;  %v8761_v30 = vpop.f32.mrb[7].mxu1 }
 0x236   :  { %v10907_v31 = vpop.f32.mrb[8].mxu0  ;;  %v10909_v32 = vpop.f32.mrb[8].mxu1 }
 0x237   :  { %v8728_v33 = vpop.f32.mrb[9].mxu0  ;;  %v8783_v34 = vpop.f32.mrb[9].mxu1 }
 0x238   :  { %v631_v34 = vadd.f32 %v8113_v19, %v10903_v28  ;;  %v8173_v19 = vld [vmem:[%s11688_s8] ss:$0 sm:$0xff] }
 0x23e   :  { %v10911_v35 = vpop.f32.mrb[10].mxu0  ;;  %v10913_v36 = vpop.f32.mrb[10].mxu1 }
 0x23f   :  { %v8750_v37 = vpop.f32.mrb[11].mxu0  ;;  %v8805_v38 = vpop.f32.mrb[11].mxu1 }
 0x240   :  { %v984_v37 = vadd.f32 %v8118_v25, %v10905_v23  ;;  %v8147_v38 = vld [vmem:[%s11686_s6 + $0x6] ss:$0 sm:$0xff] }
 0x246   :  { %v10915_v39 = vpop.f32.mrb[12].mxu0  ;;  %v10917_v40 = vpop.f32.mrb[12].mxu1 }
 0x247   :  { %v8772_v41 = vpop.f32.mrb[13].mxu0  ;;  %v8827_v42 = vpop.f32.mrb[13].mxu1 }
 0x248   :  { %v8152_v41 = vld [vmem:[%s11686_s6 + $0xb] ss:$0 sm:$0xff]  ;;  %v8115_v42 = vld [vmem:[%s11684_s4 + $0x6] ss:$0 sm:$0xff] }
 0x249   :  { %v771_v51 = vadd.f32 %v8115_v42, %v10907_v31 }
 0x24e   :  { %v10919_v43 = vpop.f32.mrb[14].mxu0  ;;  %v1719_v44 = vpop.f32.mrb[14].mxu1 }
 0x24f   :  { %v8794_v45 = vpop.f32.mrb[15].mxu0  ;;  %v8849_v47 = vpop.f32.mrb[15].mxu1  ;;  %v1720_v5 = vadd.f32 %v8142_v1, %v1719_v44  ;;  %v8120_v44 = vld [vmem:[%s11684_s4 + $0xb] ss:$0 sm:$0xff]  ;;  %v8124_v1 = vld [vmem:[%s11684_s4 + $0xf] ss:$0 sm:$0xff] }
 0x256   :  { %v10924_v49 = vpop.f32.mrb[16].mxu0  ;;  %v1859_v50 = vpop.f32.mrb[16].mxu1 }
 0x257   :  { %v1860_v52 = vadd.f32 %v8144_v48, %v1859_v50  ;;  %v8816_v53 = vpop.f32.mrb[17].mxu0  ;;  %v8871_v54 = vpop.f32.mrb[17].mxu1 }
 0x258   :  { %v8149_v53 = vld [vmem:[%s11686_s6 + $0x8] ss:$0 sm:$0xff]  ;;  %v8154_v54 = vld [vmem:[%s11686_s6 + $0xd] ss:$0 sm:$0xff] }
 0x259   :  { %9196 = vmatpush3.xpose.msk.msra.mxu1 %vm3999_vm2, %v1860_v52  ;;  %v1124_v52 = vadd.f32 %v8120_v44, %v10909_v32 }
 0x25a   :  { %9205 = vmatprep.subr.mxu1 %v9900_v27 }
 0x25c   :  { %9198 = vmatmul.mubr.msk.f32.vlgmr.msra.gmra.mrb[46].mxu1 %vm3999_vm2, %v561_v55  ;;  %v8117_v55 = vld [vmem:[%s11684_s4 + $0x8] ss:$0 sm:$0xff] }
 0x25d   :  { %9207 = vmatprep.mubr.msk.f32.mxu1 %vm9899_vm1, %v9900_v27  ;;  %v914_v60 = vadd.f32 %v8117_v55, %v10911_v35 }
 0x25e   :  { %v1649_v57 = vpop.f32.mrb[18].mxu0  ;;  %v1999_v58 = vpop.f32.mrb[18].mxu1 }
 0x25f   :  { %v1650_v61 = vadd.f32 %v8141_v56, %v1649_v57  ;;  %v2000_v62 = vadd.f32 %v8146_v46, %v1999_v58  ;;  %v8838_v63 = vpop.f32.mrb[19].mxu0  ;;  %v8893_v0 = vpop.f32.mrb[19].mxu1  ;;  %v8122_v56 = vld [vmem:[%s11684_s4 + $0xd] ss:$0 sm:$0xff] }
 0x260   :  { %v8156_v63 = vld [vmem:[%s11686_s6 + $0xf] ss:$0 sm:$0xff]  ;;  %v8119_v0 = vld [vmem:[%s11684_s4 + $0xa] ss:$0 sm:$0xff] }
 0x261   :  { %9181 = vmatpush3.xpose.msk.msra.mxu0 %vm3999_vm2, %v1650_v61  ;;  %9206 = vmatpush3.xpose.msk.msra.mxu1 %vm3999_vm2, %v2000_v62  ;;  %v1264_v61 = vadd.f32 %v8122_v56, %v10913_v36  ;;  %v8151_v62 = vld [vmem:[%s11686_s6 + $0xa] ss:$0 sm:$0xff] }
 0x262   :  { %9185 = vmatprep.subr.mxu0 %v9900_v27  ;;  %9215 = vmatprep.subr.mxu1 %v9900_v27 }
 0x264   :  { %9183 = vmatmul.mubr.msk.f32.vlgmr.msra.gmra.mrb[50].mxu0 %vm3999_vm2, %v351_v2  ;;  %9208 = vmatmul.mubr.msk.f32.vlgmr.msra.gmra.mrb[48].mxu1 %vm3999_vm2, %v701_v3 }
 0x265   :  { %9186 = vmatpush3.xpose.msk.msra.mxu0 %vm3999_vm2, %v1720_v5  ;;  %9187 = vmatprep.mubr.msk.f32.mxu0 %vm9899_vm1, %v9900_v27 }
 0x266   :  { %v1789_v9 = vpop.f32.mrb[20].mxu0  ;;  %v2139_v11 = vpop.f32.mrb[20].mxu1  ;;  %9190 = vmatprep.subr.mxu0 %v9900_v27  ;;  %9217 = vmatprep.mubr.msk.f32.mxu1 %vm9899_vm1, %v9900_v27 }
 0x267   :  { %v1790_v13 = vadd.f32 %v8143_v6, %v1789_v9  ;;  %v2140_v14 = vadd.f32 %v8148_v7, %v2139_v11  ;;  %v8860_v15 = vpop.f32.mrb[21].mxu0  ;;  %v8915_v16 = vpop.f32.mrb[21].mxu1  ;;  %v1054_v6 = vadd.f32 %v8119_v0, %v10915_v39  ;;  %v1404_v7 = vadd.f32 %v8124_v1, %v10917_v40  ;;  %v8174_v9 = vld [vmem:[%s11688_s8 + $0x1] ss:$0 sm:$0xff]  ;;  %v8121_v11 = vld [vmem:[%s11684_s4 + $0xc] ss:$0 sm:$0xff] }
 0x268   :  { %9188 = vmatmul.mubr.msk.f32.vlgmr.msra.gmra.mrb[52].mxu0 %vm3999_vm2, %v421_v8  ;;  %v8153_v8 = vld [vmem:[%s11686_s6 + $0xc] ss:$0 sm:$0xff]  ;;  %v1194_v15 = vadd.f32 %v8121_v11, %v10919_v43  ;;  %v8155_v16 = vld [vmem:[%s11686_s6 + $0xe] ss:$0 sm:$0xff] }
 0x269   :  { %9191 = vmatpush3.xpose.msk.msra.mxu0 %vm3999_vm2, %v1790_v13  ;;  %9216 = vmatpush3.xpose.msk.msra.mxu1 %vm3999_vm2, %v2140_v14  ;;  %v8123_v43 = vld [vmem:[%s11684_s4 + $0xe] ss:$0 sm:$0xff] }
 0x26a   :  { %9192 = vmatprep.mubr.msk.f32.mxu0 %vm9899_vm1, %v9900_v27  ;;  %9200 = vmatprep.subr.mxu0 %v9900_v27 }
 0x26b   :  { %9225 = vmatprep.subr.mxu1 %v9900_v27 }
 0x26c   :  { %9193 = vmatmul.mubr.msk.f32.vlgmr.msra.gmra.mrb[54].mxu0 %vm3999_vm2, %v491_v17  ;;  %9218 = vmatmul.mubr.msk.f32.vlgmr.msra.gmra.mrb[50].mxu1 %vm3999_vm2, %v841_v18 }
 0x26d   :  { %9202 = vmatprep.mubr.msk.f32.mxu0 %vm9899_vm1, %v9900_v27  ;;  %9227 = vmatprep.mubr.msk.f32.mxu1 %vm9899_vm1, %v9900_v27 }
 0x26e   :  { %v1929_v22 = vpop.f32.mrb[22].mxu0  ;;  %v2279_v24 = vpop.f32.mrb[22].mxu1 }
 0x26f   :  { %v1930_v26 = vadd.f32 %v8145_v20, %v1929_v22  ;;  %v2280_v29 = vadd.f32 %v8150_v21, %v2279_v24  ;;  %v8882_v30 = vpop.f32.mrb[23].mxu0  ;;  %v8937_v33 = vpop.f32.mrb[23].mxu1  ;;  %v1334_v24 = vadd.f32 %v8123_v43, %v10924_v49 }
 0x271   :  { %9201 = vmatpush3.xpose.msk.msra.mxu0 %vm3999_vm2, %v1930_v26  ;;  %9226 = vmatpush3.xpose.msk.msra.mxu1 %vm3999_vm2, %v2280_v29 }
 0x272   :  { %9210 = vmatprep.subr.mxu0 %v9900_v27  ;;  %9235 = vmatprep.subr.mxu1 %v9900_v27 }
 0x274   :  { %9203 = vmatmul.mubr.msk.f32.vlgmr.msra.gmra.mrb[56].mxu0 %vm3999_vm2, %v631_v34  ;;  %9228 = vmatmul.mubr.msk.f32.vlgmr.msra.gmra.mrb[52].mxu1 %vm3999_vm2, %v984_v37 }
 0x275   :  { %9212 = vmatprep.mubr.msk.f32.mxu0 %vm9899_vm1, %v9900_v27  ;;  %9237 = vmatprep.mubr.msk.f32.mxu1 %vm9899_vm1, %v9900_v27 }
 0x276   :  { %v2069_v28 = vpop.f32.mrb[24].mxu0  ;;  %v2419_v23 = vpop.f32.mrb[24].mxu1 }
 0x277   :  { %v2070_v45 = vadd.f32 %v8147_v38, %v2069_v28  ;;  %v2420_v47 = vadd.f32 %v8152_v41, %v2419_v23  ;;  %v8904_v48 = vpop.f32.mrb[25].mxu0  ;;  %v8959_v50 = vpop.f32.mrb[25].mxu1 }
 0x279   :  { %9211 = vmatpush3.xpose.msk.msra.mxu0 %vm3999_vm2, %v2070_v45  ;;  %9236 = vmatpush3.xpose.msk.msra.mxu1 %vm3999_vm2, %v2420_v47 }
 0x27a   :  { %9220 = vmatprep.subr.mxu0 %v9900_v27  ;;  %9245 = vmatprep.subr.mxu1 %v9900_v27 }
 0x27c   :  { %9213 = vmatmul.mubr.msk.f32.vlgmr.msra.gmra.mrb[58].mxu0 %vm3999_vm2, %v771_v51  ;;  %9238 = vmatmul.mubr.msk.f32.vlgmr.msra.gmra.mrb[54].mxu1 %vm3999_vm2, %v1124_v52 }
 0x27d   :  { %9222 = vmatprep.mubr.msk.f32.mxu0 %vm9899_vm1, %v9900_v27  ;;  %9247 = vmatprep.mubr.msk.f32.mxu1 %vm9899_vm1, %v9900_v27 }
 0x27e   :  { %v2209_v31 = vpop.f32.mrb[26].mxu0  ;;  %v2559_v32 = vpop.f32.mrb[26].mxu1 }
 0x27f   :  { %v2210_v46 = vadd.f32 %v8149_v53, %v2209_v31  ;;  %v2560_v57 = vadd.f32 %v8154_v54, %v2559_v32  ;;  %v8926_v58 = vpop.f32.mrb[27].mxu0  ;;  %v8981_v59 = vpop.f32.mrb[27].mxu1 }
 0x281   :  { %9221 = vmatpush3.xpose.msk.msra.mxu0 %vm3999_vm2, %v2210_v46  ;;  %9246 = vmatpush3.xpose.msk.msra.mxu1 %vm3999_vm2, %v2560_v57 }
 0x282   :  { %9230 = vmatprep.subr.mxu0 %v9900_v27  ;;  %9255 = vmatprep.subr.mxu1 %v9900_v27 }
 0x284   :  { %9223 = vmatmul.mubr.msk.f32.vlgmr.msra.gmra.mrb[60].mxu0 %vm3999_vm2, %v914_v60  ;;  %9248 = vmatmul.mubr.msk.f32.vlgmr.msra.gmra.mrb[56].mxu1 %vm3999_vm2, %v1264_v61 }
 0x285   :  { %9232 = vmatprep.mubr.msk.f32.mxu0 %vm9899_vm1, %v9900_v27  ;;  %9257 = vmatprep.mubr.msk.f32.mxu1 %vm9899_vm1, %v9900_v27 }
 0x286   :  { %v2349_v35 = vpop.f32.mrb[28].mxu0  ;;  %v2699_v36 = vpop.f32.mrb[28].mxu1 }
 0x287   :  { %v2350_v2 = vadd.f32 %v8151_v62, %v2349_v35  ;;  %v2700_v3 = vadd.f32 %v8156_v63, %v2699_v36  ;;  %v8948_v4 = vpop.f32.mrb[29].mxu0  ;;  %v9003_v5 = vpop.f32.mrb[29].mxu1 }
 0x289   :  { %9231 = vmatpush3.xpose.msk.msra.mxu0 %vm3999_vm2, %v2350_v2  ;;  %9256 = vmatpush3.xpose.msk.msra.mxu1 %vm3999_vm2, %v2700_v3 }
 0x28a   :  { %9240 = vmatprep.subr.mxu0 %v9900_v27  ;;  %9265 = vmatprep.subr.mxu1 %v9900_v27 }
 0x28c   :  { %9233 = vmatmul.mubr.msk.f32.vlgmr.msra.gmra.mrb[62].mxu0 %vm3999_vm2, %v1054_v6  ;;  %9258 = vmatmul.mubr.msk.f32.vlgmr.msra.gmra.mrb[58].mxu1 %vm3999_vm2, %v1404_v7 }
 0x28d   :  { %9242 = vmatprep.mubr.msk.f32.mxu0 %vm9899_vm1, %v9900_v27  ;;  %9267 = vmatprep.mubr.msk.f32.mxu1 %vm9899_vm1, %v9900_v27 }
 0x28e   :  { %v2489_v39 = vpop.f32.mrb[30].mxu0  ;;  %v3015_v40 = vpop.f32.mrb[30].mxu1 }
 0x28f   :  { %v2490_v12 = vadd.f32 %v8153_v8, %v2489_v39  ;;  %v3016_v10 = vadd.f32 %v8174_v9, %v3015_v40  ;;  %v8970_v13 = vpop.f32.mrb[31].mxu0  ;;  %v9025_v14 = vpop.f32.mrb[31].mxu1 }
 0x291   :  { %9241 = vmatpush3.xpose.msk.msra.mxu0 %vm3999_vm2, %v2490_v12  ;;  %9266 = vmatpush3.msra.mxu1 %v3016_v10 }
 0x292   :  { %9250 = vmatprep.subr.mxu0 %v9900_v27  ;;  %9275 = vmatprep.subr.mxu1 %v9900_v27 }
 0x294   :  { %9243 = vmatmul.mubr.msk.f32.vlgmr.msra.gmra.mrb[64].mxu0 %vm3999_vm2, %v1194_v15 }
 0x295   :  { %9252 = vmatprep.mubr.msk.f32.mxu0 %vm9899_vm1, %v9900_v27 }
 0x296   :  { %v2629_v17 = vpop.f32.mrb[32].mxu0  ;;  %v11107_v18 = vpop.f32.mrb[32].mxu1 }
 0x297   :  { %v2630_v20 = vadd.f32 %v8155_v16, %v2629_v17  ;;  %v8992_v21 = vpop.f32.mrb[33].mxu0  ;;  %v9047_v22 = vpop.f32.mrb[33].mxu1 }
 0x299   :  { %9251 = vmatpush3.xpose.msk.msra.mxu0 %vm3999_vm2, %v2630_v20 }
 0x29a   :  { %9260 = vmatprep.subr.mxu0 %v9900_v27 }
 0x29c   :  { %9253 = vmatmul.mubr.msk.f32.vlgmr.msra.gmra.mrb[66].mxu0 %vm3999_vm2, %v1334_v24 }
 0x29d   :  { %9262 = vmatprep.mubr.msk.f32.mxu0 %vm9899_vm1, %v9900_v27 }
 0x29e   :  { %v2945_v25 = vpop.f32.mrb[34].mxu0  ;;  %v11121_v26 = vpop.f32.mrb[34].mxu1 }
 0x29f   :  { %v2946_v29 = vadd.f32 %v8173_v19, %v2945_v25  ;;  %v9014_v30 = vpop.f32.mrb[35].mxu0  ;;  %v9069_v33 = vpop.f32.mrb[35].mxu1 }
 0x2a1   :  { %9261 = vmatpush3.msra.mxu0 %v2946_v29 }
 0x2a2   :  { %9270 = vmatprep.subr.mxu0 %v9900_v27 }
 0x2a6   :  { %v11124_v49 = vpop.f32.mrb[36].mxu0  ;;  %v11126_v34 = vpop.f32.mrb[36].mxu1 }
 0x2a7   :  { %v9036_v37 = vpop.f32.mrb[37].mxu0  ;;  %v9091_v38 = vpop.f32.mrb[37].mxu1 }
 0x2ae   :  { %v11128_v41 = vpop.f32.mrb[38].mxu0  ;;  %v11130_v28 = vpop.f32.mrb[38].mxu1 }
 0x2af   :  { %v9058_v23 = vpop.f32.mrb[39].mxu0  ;;  %v9113_v42 = vpop.f32.mrb[39].mxu1 }
 0x2b6   :  { %v11132_v44 = vpop.f32.mrb[40].mxu0  ;;  %v11134_v45 = vpop.f32.mrb[40].mxu1 }
 0x2b7   :  { %v9080_v47 = vpop.f32.mrb[41].mxu0  ;;  %v9135_v48 = vpop.f32.mrb[41].mxu1 }
 0x2be   :  { %v11136_v50 = vpop.f32.mrb[42].mxu0  ;;  %v11138_v51 = vpop.f32.mrb[42].mxu1 }
 0x2bf   :  { %v9102_v52 = vpop.f32.mrb[43].mxu0  ;;  %v9157_v53 = vpop.f32.mrb[43].mxu1 }
 0x2c6   :  { %v11140_v54 = vpop.f32.mrb[44].mxu0  ;;  %v11142_v31 = vpop.f32.mrb[44].mxu1 }
 0x2c7   :  { %v9124_v32 = vpop.f32.mrb[45].mxu0  ;;  %v9179_v55 = vpop.f32.mrb[45].mxu1 }
 0x2ce   :  { %v11144_v56 = vpop.f32.mrb[46].mxu0 }
 0x2cf   :  { %v9146_v46 = vpop.f32.mrb[47].mxu0 }
 0x2d6   :  { %v11146_v57 = vpop.f32.mrb[48].mxu0 }
 0x2d7   :  { %v9168_v58 = vpop.f32.mrb[49].mxu0 }
 0x32f   :  { %v4300_v59 = vpop.f32.mrb[46].mxu1 }
 0x330   :  { %v9199_v60 = vpop.f32.mrb[47].mxu1  ;;  %v11154_v4 = vmul.f32 0.5, %v4300_v59 }
 0x332   :  { %v5242_v11 = vsel %vm5232_vm3, %v11154_v4, -inf }
 0x337   :  { %v4072_v61 = vpop.f32.mrb[50].mxu0  ;;  %v4452_v62 = vpop.f32.mrb[48].mxu1 }
 0x338   :  { %v11148_v63 = vmul.f32 0.5, %v4072_v61  ;;  %v9184_v35 = vpop.f32.mrb[51].mxu0  ;;  %v9209_v36 = vpop.f32.mrb[49].mxu1  ;;  %v11160_v40 = vmul.f32 0.5, %v4452_v62 }
 0x33a   :  { %v5233_v0 = vsel %vm5232_vm3, %v11148_v63, -inf  ;;  %v5248_v13 = vsel %vm5232_vm3, %v11160_v40, -inf }
 0x33b   :  { %5234 = vmax.xlane.f32.xlu0 %v5233_v0  ;;  %v4148_v1 = vpop.f32.mrb[52].mxu0 }
 0x33c   :  { %v11152_v2 = vmul.f32 0.5, %v4148_v1  ;;  %v9189_v3 = vpop.f32.mrb[53].mxu0 }
 0x33e   :  { %v5236_v5 = vsel %vm5232_vm3, %v11152_v2, -inf }
 0x33f   :  { %v4604_v6 = vpop.f32.mrb[50].mxu1  ;;  %5237 = vmax.xlane.f32.xlu1 %v5236_v5  ;;  %v4224_v7 = vpop.f32.mrb[54].mxu0 }
 0x340   :  { %v11158_v8 = vmul.f32 0.5, %v4224_v7  ;;  %v9194_v9 = vpop.f32.mrb[55].mxu0  ;;  %v9219_v39 = vpop.f32.mrb[51].mxu1  ;;  %v11166_v10 = vmul.f32 0.5, %v4604_v6 }
 0x342   :  { %v5239_v12 = vsel %vm5232_vm3, %v11158_v8, -inf  ;;  %v5254_v21 = vsel %vm5232_vm3, %v11166_v10, -inf }
 0x343   :  { %5243 = vmax.xlane.f32.xlu1 %v5242_v11  ;;  %5240 = vmax.xlane.f32.xlu0 %v5239_v12 }
 0x347   :  { %v4756_v14 = vpop.f32.mrb[52].mxu1  ;;  %5249 = vmax.xlane.f32.xlu1 %v5248_v13  ;;  %v4376_v15 = vpop.f32.mrb[56].mxu0 }
 0x348   :  { %v11170_v16 = vmul.f32 0.5, %v4376_v15  ;;  %v9204_v17 = vpop.f32.mrb[57].mxu0  ;;  %v9229_v43 = vpop.f32.mrb[53].mxu1  ;;  %v11172_v20 = vmul.f32 0.5, %v4756_v14 }
 0x34a   :  { %v5245_v22 = vsel %vm5232_vm3, %v11170_v16, -inf  ;;  %v5260_v24 = vsel %vm5232_vm3, %v11172_v20, -inf }
 0x34b   :  { %5255 = vmax.xlane.f32.xlu1 %v5254_v21  ;;  %5246 = vmax.xlane.f32.xlu0 %v5245_v22 }
 0x34f   :  { %v4908_v19 = vpop.f32.mrb[54].mxu1  ;;  %5261 = vmax.xlane.f32.xlu1 %v5260_v24  ;;  %v4528_v25 = vpop.f32.mrb[58].mxu0 }
 0x350   :  { %v11180_v29 = vmul.f32 0.5, %v4908_v19  ;;  %v11182_v30 = vmul.f32 0.5, %v4528_v25  ;;  %v9214_v33 = vpop.f32.mrb[59].mxu0  ;;  %v9239_v37 = vpop.f32.mrb[55].mxu1 }
 0x352   :  { %v5266_v38 = vsel %vm5232_vm3, %v11180_v29, -inf  ;;  %v5251_v23 = vsel %vm5232_vm3, %v11182_v30, -inf }
 0x353   :  { %5267 = vmax.xlane.f32.xlu1 %v5266_v38  ;;  %5252 = vmax.xlane.f32.xlu0 %v5251_v23 }
 0x357   :  { %v4680_v42 = vpop.f32.mrb[60].mxu0  ;;  %v5060_v47 = vpop.f32.mrb[56].mxu1 }
 0x358   :  { %v11188_v48 = vmul.f32 0.5, %v4680_v42  ;;  %v11190_v52 = vmul.f32 0.5, %v5060_v47  ;;  %v9224_v53 = vpop.f32.mrb[61].mxu0  ;;  %v9249_v32 = vpop.f32.mrb[57].mxu1 }
 0x35a   :  { %v5272_v55 = vsel %vm5232_vm3, %v11190_v52, -inf  ;;  %v5257_v46 = vsel %vm5232_vm3, %v11188_v48, -inf }
 0x35b   :  { %5273 = vmax.xlane.f32.xlu1 %v5272_v55  ;;  %5258 = vmax.xlane.f32.xlu0 %v5257_v46 }
 0x35f   :  { %v4832_v58 = vpop.f32.mrb[62].mxu0  ;;  %v5212_v59 = vpop.f32.mrb[58].mxu1 }
 0x360   :  { %v11196_v60 = vmul.f32 0.5, %v4832_v58  ;;  %v11198_v61 = vmul.f32 0.5, %v5212_v59  ;;  %v9234_v62 = vpop.f32.mrb[63].mxu0  ;;  %v9259_v35 = vpop.f32.mrb[59].mxu1 }
 0x362   :  { %v5278_v36 = vsel %vm5232_vm3, %v11198_v61, -inf  ;;  %v5263_v0 = vsel %vm5232_vm3, %v11196_v60, -inf }
 0x363   :  { %5279 = vmax.xlane.f32.xlu1 %v5278_v36  ;;  %5264 = vmax.xlane.f32.xlu0 %v5263_v0 }
 0x367   :  { %v4984_v1 = vpop.f32.mrb[64].mxu0 }
 0x368   :  { %v11204_v3 = vmul.f32 0.5, %v4984_v1  ;;  %v9244_v5 = vpop.f32.mrb[65].mxu0 }
 0x36a   :  { %v5269_v6 = vsel %vm5232_vm3, %v11204_v3, -inf }
 0x36b   :  { %5270 = vmax.xlane.f32.xlu0 %v5269_v6 }
 0x36f   :  { %v5136_v7 = vpop.f32.mrb[66].mxu0 }
 0x370   :  { %v11208_v9 = vmul.f32 0.5, %v5136_v7  ;;  %v9254_v39 = vpop.f32.mrb[67].mxu0 }
 0x372   :  { %v5275_v11 = vsel %vm5232_vm3, %v11208_v9, -inf }
 0x373   :  { %5276 = vmax.xlane.f32.xlu0 %v5275_v11 }
 0x3c8   :  { %v5235_v12 = vpop.xlane.xlu0 %5234 }
 0x3c9   :  { %v5281_v13 = vsub.f32 %v11148_v63, %v5235_v12 }
 0x3cb   :  { %v5297_v14 = vmul.f32 1.442695, %v5281_v13 }
 0x3cc   :  { %v5238_v15 = vpop.xlane.xlu1 %5237 }
 0x3cd   :  { %9804 = vpow2.f32 %v5297_v14  ;;  %v5282_v17 = vsub.f32 %v11152_v2, %v5238_v15 }
 0x3cf   :  { %v5299_v43 = vmul.f32 1.442695, %v5282_v17 }
 0x3d0   :  { %v5244_v21 = vpop.xlane.xlu1 %5243  ;;  %v5241_v22 = vpop.xlane.xlu0 %5240 }
 0x3d1   :  { %9806 = vpow2.f32 %v5299_v43  ;;  %v5284_v24 = vsub.f32 %v11154_v4, %v5244_v21  ;;  %v5283_v19 = vsub.f32 %v11158_v8, %v5241_v22 }
 0x3d3   :  { %v5303_v25 = vmul.f32 1.442695, %v5284_v24  ;;  %v5301_v33 = vmul.f32 1.442695, %v5283_v19 }
 0x3d4   :  { %v5250_v37 = vpop.xlane.xlu1 %5249 }
 0x3d5   :  { %9808 = vpow2.f32 %v5303_v25  ;;  %v5286_v38 = vsub.f32 %v11160_v40, %v5250_v37 }
 0x3d6   :  { %9810 = vpow2.f32 %v5301_v33 }
 0x3d7   :  { %v11217_v63 = vpop.eup %9804  ;;  %v5307_v23 = vmul.f32 1.442695, %v5286_v38 }
 0x3d8   :  { %v5256_v42 = vpop.xlane.xlu1 %5255  ;;  %v5247_v2 = vpop.xlane.xlu0 %5246  ;;  %v5329_v47 = vsel %vm5232_vm3, %v11217_v63, 0.0 }
 0x3d9   :  { %9812 = vpow2.f32 %v5307_v23  ;;  %v5288_v4 = vsub.f32 %v11166_v10, %v5256_v42  ;;  %v5285_v8 = vsub.f32 %v11170_v16, %v5247_v2  ;;  %5330 = vadd.xlane.f32.xlu0 %v5329_v47 }
 0x3db   :  { %v11223_v53 = vpop.eup %9806  ;;  %v5311_v32 = vmul.f32 1.442695, %v5288_v4  ;;  %v5305_v55 = vmul.f32 1.442695, %v5285_v8 }
 0x3dc   :  { %v5262_v40 = vpop.xlane.xlu1 %5261  ;;  %v5332_v46 = vsel %vm5232_vm3, %v11223_v53, 0.0 }
 0x3dd   :  { %9814 = vpow2.f32 %v5311_v32  ;;  %v5290_v58 = vsub.f32 %v11172_v20, %v5262_v40  ;;  %5333 = vadd.xlane.f32.xlu1 %v5332_v46 }
 0x3de   :  { %9816 = vpow2.f32 %v5305_v55 }
 0x3df   :  { %v11228_v59 = vpop.eup %9808  ;;  %v5315_v62 = vmul.f32 1.442695, %v5290_v58 }
 0x3e0   :  { %v11230_v10 = vpop.eup %9810  ;;  %v5268_v16 = vpop.xlane.xlu1 %5267  ;;  %v5338_v36 = vsel %vm5232_vm3, %v11228_v59, 0.0 }
 0x3e1   :  { %v5253_v35 = vpop.xlane.xlu0 %5252  ;;  %9818 = vpow2.f32 %v5315_v62  ;;  %v5292_v0 = vsub.f32 %v11180_v29, %v5268_v16  ;;  %5339 = vadd.xlane.f32.xlu1 %v5338_v36  ;;  %v5335_v20 = vsel %vm5232_vm3, %v11230_v10, 0.0 }
 0x3e2   :  { %v5287_v1 = vsub.f32 %v11182_v30, %v5253_v35  ;;  %5336 = vadd.xlane.f32.xlu0 %v5335_v20 }
 0x3e3   :  { %v11238_v5 = vpop.eup %9812  ;;  %v5319_v6 = vmul.f32 1.442695, %v5292_v0 }
 0x3e4   :  { %v5309_v7 = vmul.f32 1.442695, %v5287_v1  ;;  %v5344_v39 = vsel %vm5232_vm3, %v11238_v5, 0.0 }
 0x3e5   :  { %9820 = vpow2.f32 %v5319_v6  ;;  %5345 = vadd.xlane.f32.xlu1 %v5344_v39 }
 0x3e6   :  { %9822 = vpow2.f32 %v5309_v7 }
 0x3e7   :  { %v11242_v11 = vpop.eup %9814 }
 0x3e8   :  { %v11244_v29 = vpop.eup %9816  ;;  %v5274_v30 = vpop.xlane.xlu1 %5273  ;;  %v5350_v13 = vsel %vm5232_vm3, %v11242_v11, 0.0 }
 0x3e9   :  { %v5259_v12 = vpop.xlane.xlu0 %5258  ;;  %v5294_v14 = vsub.f32 %v11190_v52, %v5274_v30  ;;  %5351 = vadd.xlane.f32.xlu1 %v5350_v13  ;;  %v5341_v17 = vsel %vm5232_vm3, %v11244_v29, 0.0  ;;  %v8175_v30 = vld [vmem:[%s11688_s8 + $0x2] ss:$0 sm:$0xff] }
 0x3ea   :  { %v5289_v15 = vsub.f32 %v11188_v48, %v5259_v12  ;;  %5342 = vadd.xlane.f32.xlu0 %v5341_v17  ;;  %v8176_v17 = vld [vmem:[%s11688_s8 + $0x3] ss:$0 sm:$0xff] }
 0x3eb   :  { %v11252_v43 = vpop.eup %9818  ;;  %v5323_v21 = vmul.f32 1.442695, %v5294_v14 }
 0x3ec   :  { %v5313_v22 = vmul.f32 1.442695, %v5289_v15  ;;  %v5356_v24 = vsel %vm5232_vm3, %v11252_v43, 0.0  ;;  %v3086_v15 = vadd.f32 %v8175_v30, %v11124_v49 }
 0x3ed   :  { %9824 = vpow2.f32 %v5323_v21  ;;  %5357 = vadd.xlane.f32.xlu1 %v5356_v24 }
 0x3ee   :  { %9826 = vpow2.f32 %v5313_v22 }
 0x3ef   :  { %v11256_v19 = vpop.eup %9820 }
 0x3f0   :  { %v11258_v52 = vpop.eup %9822  ;;  %v5280_v48 = vpop.xlane.xlu1 %5279  ;;  %v5362_v33 = vsel %vm5232_vm3, %v11256_v19, 0.0 }
 0x3f1   :  { %v5265_v25 = vpop.xlane.xlu0 %5264  ;;  %v5296_v37 = vsub.f32 %v11198_v61, %v5280_v48  ;;  %5363 = vadd.xlane.f32.xlu1 %v5362_v33  ;;  %v5347_v23 = vsel %vm5232_vm3, %v11258_v52, 0.0  ;;  %v8178_v48 = vld [vmem:[%s11688_s8 + $0x5] ss:$0 sm:$0xff]  ;;  %v8177_v33 = vld [vmem:[%s11688_s8 + $0x4] ss:$0 sm:$0xff] }
 0x3f2   :  { %v5291_v38 = vsub.f32 %v11196_v60, %v5265_v25  ;;  %5348 = vadd.xlane.f32.xlu0 %v5347_v23 }
 0x3f3   :  { %v5327_v42 = vmul.f32 1.442695, %v5296_v37 }
 0x3f4   :  { %v5317_v2 = vmul.f32 1.442695, %v5291_v38  ;;  %v3296_v38 = vadd.f32 %v8178_v48, %v11121_v26 }
 0x3f5   :  { %9828 = vpow2.f32 %v5327_v42  ;;  %v8180_v42 = vld [vmem:[%s11688_s8 + $0x7] ss:$0 sm:$0xff] }
 0x3f6   :  { %9830 = vpow2.f32 %v5317_v2  ;;  %v3226_v2 = vadd.f32 %v8177_v33, %v11128_v41  ;;  %v3436_v26 = vadd.f32 %v8180_v42, %v11126_v34  ;;  %v8182_v41 = vld [vmem:[%s11688_s8 + $0x9] ss:$0 sm:$0xff]  ;;  %v8179_v34 = vld [vmem:[%s11688_s8 + $0x6] ss:$0 sm:$0xff] }
 0x3f7   :  { %v11266_v47 = vpop.eup %9824 }
 0x3f8   :  { %v11268_v4 = vpop.eup %9826  ;;  %v5271_v8 = vpop.xlane.xlu0 %5270  ;;  %v5368_v32 = vsel %vm5232_vm3, %v11266_v47, 0.0 }
 0x3f9   :  { %v5293_v61 = vsub.f32 %v11204_v3, %v5271_v8  ;;  %5369 = vadd.xlane.f32.xlu1 %v5368_v32  ;;  %v5353_v60 = vsel %vm5232_vm3, %v11268_v4, 0.0 }
 0x3fa   :  { %5354 = vadd.xlane.f32.xlu0 %v5353_v60 }
 0x3fb   :  { %v5321_v55 = vmul.f32 1.442695, %v5293_v61 }
 0x3fd   :  { %9832 = vpow2.f32 %v5321_v55  ;;  %v3576_v55 = vadd.f32 %v8182_v41, %v11130_v28  ;;  %v6586_v41 = vld [vmem:[%s11689_s9 + $0x24] sm:$0xf] }
 0x3ff   :  { %v11275_v40 = vpop.eup %9828 }
 0x400   :  { %v11277_v46 = vpop.eup %9830  ;;  %v5277_v58 = vpop.xlane.xlu0 %5276  ;;  %v5374_v62 = vsel %vm5232_vm3, %v11275_v40, 0.0 }
 0x401   :  { %v5295_v16 = vsub.f32 %v11208_v9, %v5277_v58  ;;  %5375 = vadd.xlane.f32.xlu1 %v5374_v62  ;;  %v5359_v3 = vsel %vm5232_vm3, %v11277_v46, 0.0  ;;  %v3366_v62 = vadd.f32 %v8179_v34, %v11132_v44 }
 0x402   :  { %5360 = vadd.xlane.f32.xlu0 %v5359_v3 }
 0x403   :  { %v5325_v35 = vmul.f32 1.442695, %v5295_v16  ;;  %v8184_v16 = vld [vmem:[%s11688_s8 + $0xb] ss:$0 sm:$0xff] }
 0x404   :  { %v3716_v28 = vadd.f32 %v8184_v16, %v11134_v45  ;;  %v8181_v45 = vld [vmem:[%s11688_s8 + $0x8] ss:$0 sm:$0xff] }
 0x405   :  { %9834 = vpow2.f32 %v5325_v35 }
 0x407   :  { %v11284_v36 = vpop.eup %9832 }
 0x408   :  { %v5365_v0 = vsel %vm5232_vm3, %v11284_v36, 0.0 }
 0x409   :  { %5366 = vadd.xlane.f32.xlu0 %v5365_v0 }
 0x40f   :  { %v11288_v1 = vpop.eup %9834 }
 0x410   :  { %v5371_v20 = vsel %vm5232_vm3, %v11288_v1, 0.0 }
 0x411   :  { %5372 = vadd.xlane.f32.xlu0 %v5371_v20 }
 0x466   :  { %v5331_v9 = vpop.xlane.xlu0 %5330 }
 0x467   :  { %9836 = vrcp.f32 %v5331_v9 }
 0x46a   :  { %v5334_v6 = vpop.xlane.xlu1 %5333 }
 0x46b   :  { %9838 = vrcp.f32 %v5334_v6 }
 0x46e   :  { %v5340_v7 = vpop.xlane.xlu1 %5339 }
 0x46f   :  { %9840 = vrcp.f32 %v5340_v7  ;;  %v5337_v39 = vpop.xlane.xlu0 %5336  ;;  %v3506_v7 = vadd.f32 %v8181_v45, %v11136_v50  ;;  %v8188_v50 = vld [vmem:[%s11688_s8 + $0xf] ss:$0 sm:$0xff] }
 0x470   :  { %9842 = vrcp.f32 %v5337_v39 }
 0x471   :  { %v9837_v12 = vpop.eup %9836 }
 0x472   :  { %v5393_v13 = vmul.f32 %v9837_v12, %v11217_v63  ;;  %v5346_v14 = vpop.xlane.xlu1 %5345  ;;  %v3156_v63 = vadd.f32 %v8176_v17, %v11107_v18 }
 0x473   :  { %9844 = vrcp.f32 %v5346_v14 }
 0x474   :  { %9263 = vmatmul.mubr.msk.f32.vlgmr.msra.gmra.mrb[68].mxu0 %vm5232_vm3, %v5393_v13  ;;  %v3996_v13 = vadd.f32 %v8188_v50, %v11142_v31 }
 0x475   :  { %v9839_v21 = vpop.eup %9838  ;;  %9271 = vmatpush3.msra.mxu0 %v3086_v15  ;;  %9272 = vmatprep.mubr.msk.f32.mxu0 %vm9899_vm1, %v9900_v27 }
 0x476   :  { %v5394_v22 = vmul.f32 %v9839_v21, %v11223_v53  ;;  %v5352_v24 = vpop.xlane.xlu1 %5351  ;;  %9280 = vmatprep.subr.mxu0 %v9900_v27 }
 0x477   :  { %9846 = vrcp.f32 %v5352_v24  ;;  %v5343_v49 = vpop.xlane.xlu0 %5342 }
 0x478   :  { %9848 = vrcp.f32 %v5343_v49  ;;  %9268 = vmatmul.mubr.msk.f32.vlgmr.msra.gmra.mrb[60].mxu1 %vm5232_vm3, %v5394_v22 }
 0x479   :  { %v9841_v25 = vpop.eup %9840  ;;  %9276 = vmatpush3.msra.mxu1 %v3156_v63  ;;  %9277 = vmatprep.mubr.msk.f32.mxu1 %vm9899_vm1, %v9900_v27 }
 0x47a   :  { %v9843_v53 = vpop.eup %9842  ;;  %v5396_v18 = vmul.f32 %v9841_v25, %v11228_v59  ;;  %v5358_v37 = vpop.xlane.xlu1 %5357  ;;  %9285 = vmatprep.subr.mxu1 %v9900_v27 }
 0x47b   :  { %v5395_v23 = vmul.f32 %v9843_v53, %v11230_v10  ;;  %9850 = vrcp.f32 %v5358_v37  ;;  %v6580_v53 = vld [vmem:[%s11689_s9 + $0xc] sm:$0xf] }
 0x47c   :  { %9278 = vmatmul.mubr.msk.f32.vlgmr.msra.gmra.mrb[62].mxu1 %vm5232_vm3, %v5396_v18 }
 0x47d   :  { %v9845_v8 = vpop.eup %9844  ;;  %9273 = vmatmul.mubr.msk.f32.vlgmr.msra.gmra.mrb[70].mxu0 %vm5232_vm3, %v5395_v23  ;;  %9286 = vmatpush3.msra.mxu1 %v3296_v38  ;;  %v6582_v38 = vld [vmem:[%s11689_s9 + $0x14] sm:$0xf] }
 0x47e   :  { %v5398_v59 = vmul.f32 %v9845_v8, %v11238_v5  ;;  %9281 = vmatpush3.msra.mxu0 %v3226_v2  ;;  %v5364_v32 = vpop.xlane.xlu1 %5363  ;;  %9287 = vmatprep.mubr.msk.f32.mxu1 %vm9899_vm1, %v9900_v27  ;;  %v6581_v8 = vld [vmem:[%s11689_s9 + $0x10] sm:$0xf] }
 0x47f   :  { %9852 = vrcp.f32 %v5364_v32  ;;  %v5349_v10 = vpop.xlane.xlu0 %5348  ;;  %9295 = vmatprep.subr.mxu1 %v9900_v27  ;;  %9282 = vmatprep.mubr.msk.f32.mxu0 %vm9899_vm1, %v9900_v27  ;;  %v6584_v32 = vld [vmem:[%s11689_s9 + $0x1c] sm:$0xf] }
 0x480   :  { %9854 = vrcp.f32 %v5349_v10  ;;  %9288 = vmatmul.mubr.msk.f32.vlgmr.msra.gmra.mrb[64].mxu1 %vm5232_vm3, %v5398_v59  ;;  %9290 = vmatprep.subr.mxu0 %v9900_v27 }
 0x481   :  { %v9847_v5 = vpop.eup %9846  ;;  %9296 = vmatpush3.msra.mxu1 %v3436_v26  ;;  %9297 = vmatprep.mubr.msk.f32.mxu1 %vm9899_vm1, %v9900_v27 }
 0x482   :  { %v9849_v61 = vpop.eup %9848  ;;  %v5400_v60 = vmul.f32 %v9847_v5, %v11242_v11  ;;  %9305 = vmatprep.subr.mxu1 %v9900_v27 }
 0x483   :  { %v5397_v58 = vmul.f32 %v9849_v61, %v11244_v29  ;;  %v8186_v29 = vld [vmem:[%s11688_s8 + $0xd] ss:$0 sm:$0xff] }
 0x484   :  { %9298 = vmatmul.mubr.msk.f32.vlgmr.msra.gmra.mrb[66].mxu1 %vm5232_vm3, %v5400_v60  ;;  %v3856_v9 = vadd.f32 %v8186_v29, %v11138_v51  ;;  %v6583_v60 = vld [vmem:[%s11689_s9 + $0x18] sm:$0xf] }
 0x485   :  { %v9851_v3 = vpop.eup %9850  ;;  %9283 = vmatmul.mubr.msk.f32.vlgmr.msra.gmra.mrb[72].mxu0 %vm5232_vm3, %v5397_v58  ;;  %9306 = vmatpush3.msra.mxu1 %v3576_v55  ;;  %v6588_v58 = vld [vmem:[%s11689_s9 + $0x2c] sm:$0xf] }
 0x486   :  { %v5402_v11 = vmul.f32 %v9851_v3, %v11252_v43  ;;  %9291 = vmatpush3.msra.mxu0 %v3366_v62  ;;  %v5370_v35 = vpop.xlane.xlu1 %5369  ;;  %9307 = vmatprep.mubr.msk.f32.mxu1 %vm9899_vm1, %v9900_v27  ;;  %v6590_v3 = vld [vmem:[%s11689_s9 + $0x34] sm:$0xf] }
 0x487   :  { %9856 = vrcp.f32 %v5370_v35  ;;  %v5355_v44 = vpop.xlane.xlu0 %5354  ;;  %9315 = vmatprep.subr.mxu1 %v9900_v27  ;;  %9292 = vmatprep.mubr.msk.f32.mxu0 %vm9899_vm1, %v9900_v27  ;;  %v6585_v35 = vld [vmem:[%s11689_s9 + $0x20] sm:$0xf] }
 0x488   :  { %9858 = vrcp.f32 %v5355_v44  ;;  %9308 = vmatmul.mubr.msk.f32.vlgmr.msra.gmra.mrb[68].mxu1 %vm5232_vm3, %v5402_v11  ;;  %9300 = vmatprep.subr.mxu0 %v9900_v27 }
 0x489   :  { %v9853_v43 = vpop.eup %9852  ;;  %9316 = vmatpush3.msra.mxu1 %v3716_v28  ;;  %9317 = vmatprep.mubr.msk.f32.mxu1 %vm9899_vm1, %v9900_v27 }
 0x48a   :  { %v9855_v0 = vpop.eup %9854  ;;  %v5404_v20 = vmul.f32 %v9853_v43, %v11256_v19  ;;  %9325 = vmatprep.subr.mxu1 %v9900_v27  ;;  %v6592_v43 = vld [vmem:[%s11689_s9 + $0x3c] sm:$0xf] }
 0x48b   :  { %v5399_v6 = vmul.f32 %v9855_v0, %v11258_v52  ;;  %v8183_v52 = vld [vmem:[%s11688_s8 + $0xa] ss:$0 sm:$0xff] }
 0x48c   :  { %9318 = vmatmul.mubr.msk.f32.vlgmr.msra.gmra.mrb[70].mxu1 %vm5232_vm3, %v5404_v20  ;;  %v3646_v15 = vadd.f32 %v8183_v52, %v11140_v54  ;;  %v8185_v54 = vld [vmem:[%s11688_s8 + $0xc] ss:$0 sm:$0xff]  ;;  %v6587_v0 = vld [vmem:[%s11689_s9 + $0x28] sm:$0xf]  ;;  %v6591_v52 = vld [vmem:[%s11689_s9 + $0x38] sm:$0xf] }
 0x48d   :  { %9293 = vmatmul.mubr.msk.f32.vlgmr.msra.gmra.mrb[74].mxu0 %vm5232_vm3, %v5399_v6  ;;  %9326 = vmatpush3.msra.mxu1 %v3856_v9  ;;  %v3786_v22 = vadd.f32 %v8185_v54, %v11144_v56 }
 0x48e   :  { %9301 = vmatpush3.msra.mxu0 %v3506_v7  ;;  %v5376_v39 = vpop.xlane.xlu1 %5375  ;;  %9302 = vmatprep.mubr.msk.f32.mxu0 %vm9899_vm1, %v9900_v27 }
 0x48f   :  { %9860 = vrcp.f32 %v5376_v39  ;;  %v5361_v19 = vpop.xlane.xlu0 %5360  ;;  %9310 = vmatprep.subr.mxu0 %v9900_v27  ;;  %9327 = vmatprep.mubr.msk.f32.mxu1 %vm9899_vm1, %v9900_v27  ;;  %v6589_v39 = vld [vmem:[%s11689_s9 + $0x30] sm:$0xf] }
 0x490   :  { %9862 = vrcp.f32 %v5361_v19  ;;  %9335 = vmatprep.subr.mxu1 %v9900_v27 }
 0x491   :  { %v9857_v51 = vpop.eup %9856 }
 0x492   :  { %v9859_v30 = vpop.eup %9858  ;;  %v5406_v12 = vmul.f32 %v9857_v51, %v11266_v47 }
 0x493   :  { %v5401_v14 = vmul.f32 %v9859_v30, %v11268_v4 }
 0x494   :  { %9328 = vmatmul.mubr.msk.f32.vlgmr.msra.gmra.mrb[72].mxu1 %vm5232_vm3, %v5406_v12 }
 0x495   :  { %9303 = vmatmul.mubr.msk.f32.vlgmr.msra.gmra.mrb[76].mxu0 %vm5232_vm3, %v5401_v14  ;;  %9336 = vmatpush3.msra.mxu1 %v3996_v13 }
 0x496   :  { %9311 = vmatpush3.msra.mxu0 %v3646_v15  ;;  %v5367_v17 = vpop.xlane.xlu0 %5366  ;;  %9312 = vmatprep.mubr.msk.f32.mxu0 %vm9899_vm1, %v9900_v27 }
 0x497   :  { %9864 = vrcp.f32 %v5367_v17  ;;  %9320 = vmatprep.subr.mxu0 %v9900_v27  ;;  %9337 = vmatprep.mubr.msk.f32.mxu1 %vm9899_vm1, %v9900_v27 }
 0x498   :  { %9345 = vmatprep.subr.mxu1 %v9900_v27 }
 0x499   :  { %v9861_v31 = vpop.eup %9860 }
 0x49a   :  { %v9863_v47 = vpop.eup %9862  ;;  %v5408_v4 = vmul.f32 %v9861_v31, %v11275_v40  ;;  %v8187_v40 = vld [vmem:[%s11688_s8 + $0xe] ss:$0 sm:$0xff] }
 0x49b   :  { %v5403_v21 = vmul.f32 %v9863_v47, %v11277_v46  ;;  %v3926_v63 = vadd.f32 %v8187_v40, %v11146_v57  ;;  %v6577_v57 = vld [vmem:[%s11689_s9] sm:$0xf] }
 0x49c   :  { %9338 = vmatmul.mubr.msk.f32.vlgmr.msra.gmra.mrb[74].mxu1 %vm5232_vm3, %v5408_v4 }
 0x49d   :  { %9313 = vmatmul.mubr.msk.f32.vlgmr.msra.gmra.mrb[78].mxu0 %vm5232_vm3, %v5403_v21  ;;  %9347 = vmatprep.mubr.msk.f32.mxu1 %vm9899_vm1, %v9900_v27 }
 0x49e   :  { %9321 = vmatpush3.msra.mxu0 %v3786_v22  ;;  %v5373_v24 = vpop.xlane.xlu0 %5372  ;;  %9322 = vmatprep.mubr.msk.f32.mxu0 %vm9899_vm1, %v9900_v27 }
 0x49f   :  { %9866 = vrcp.f32 %v5373_v24  ;;  %9330 = vmatprep.subr.mxu0 %v9900_v27 }
 0x4a1   :  { %v9865_v56 = vpop.eup %9864 }
 0x4a2   :  { %v5405_v46 = vmul.f32 %v9865_v56, %v11284_v36  ;;  %v6578_v36 = vld [vmem:[%s11689_s9 + $0x4] sm:$0xf] }
 0x4a3   :  { %9346 = vmatpush3.msk.msra.mxu1 %vm6596_vm4, %v6578_v36 }
 0x4a4   :  { %9323 = vmatmul.mubr.msk.f32.vlgmr.msra.gmra.mrb[80].mxu0 %vm5232_vm3, %v5405_v46  ;;  %9355 = vmatprep.subr.mxu1 %v9900_v27 }
 0x4a5   :  { %9331 = vmatpush3.msra.mxu0 %v3926_v63  ;;  %9332 = vmatprep.mubr.msk.f32.mxu0 %vm9899_vm1, %v9900_v27 }
 0x4a6   :  { %9340 = vmatprep.subr.mxu0 %v9900_v27 }
 0x4a9   :  { %v9867_v49 = vpop.eup %9866 }
 0x4aa   :  { %v5407_v48 = vmul.f32 %v9867_v49, %v11288_v1  ;;  %v6579_v1 = vld [vmem:[%s11689_s9 + $0x8] sm:$0xf] }
 0x4ac   :  { %9333 = vmatmul.mubr.msk.f32.vlgmr.msra.gmra.mrb[82].mxu0 %vm5232_vm3, %v5407_v48 }
 0x4ad   :  { %9342 = vmatprep.mubr.msk.f32.mxu0 %vm9899_vm1, %v9900_v27  ;;  %9341 = vmatpush3.msk.msra.mxu0 %vm6596_vm4, %v6577_v57 }
 0x4ae   :  { %9350 = vmatprep.subr.mxu0 %v9900_v27 }
 0x547   :  { %v5478_v25 = vpop.f32.mrb[68].mxu0 }
 0x548   :  { %v9264_v33 = vpop.f32.mrb[69].mxu0  ;;  %9343 = vmatmul.mubr.msk.f32.vlgmr.msra.gmra.mrb[84].mxu0 %vm3999_vm2, %v5478_v25 }
 0x549   :  { %9351 = vmatpush3.msk.msra.mxu0 %vm6596_vm4, %v6579_v1  ;;  %9352 = vmatprep.mubr.msk.f32.mxu0 %vm9899_vm1, %v9900_v27 }
 0x54a   :  { %9360 = vmatprep.subr.mxu0 %v9900_v27 }
 0x54b   :  { %v5551_v18 = vpop.f32.mrb[60].mxu1 }
 0x54c   :  { %v9269_v37 = vpop.f32.mrb[61].mxu1  ;;  %9348 = vmatmul.mubr.msk.f32.vlgmr.msra.gmra.mrb[76].mxu1 %vm3999_vm2, %v5551_v18 }
 0x54d   :  { %9356 = vmatpush3.msk.msra.mxu1 %vm6596_vm4, %v6580_v53  ;;  %9357 = vmatprep.mubr.msk.f32.mxu1 %vm9899_vm1, %v9900_v27 }
 0x54e   :  { %9365 = vmatprep.subr.mxu1 %v9900_v27 }
 0x54f   :  { %v5697_v23 = vpop.f32.mrb[62].mxu1 }
 0x550   :  { %v5624_v42 = vpop.f32.mrb[70].mxu0  ;;  %v9279_v2 = vpop.f32.mrb[63].mxu1  ;;  %9358 = vmatmul.mubr.msk.f32.vlgmr.msra.gmra.mrb[78].mxu1 %vm3999_vm2, %v5697_v23 }
 0x551   :  { %v9274_v59 = vpop.f32.mrb[71].mxu0  ;;  %9353 = vmatmul.mubr.msk.f32.vlgmr.msra.gmra.mrb[86].mxu0 %vm3999_vm2, %v5624_v42  ;;  %9366 = vmatpush3.msk.msra.mxu1 %vm6596_vm4, %v6582_v38 }
 0x552   :  { %9367 = vmatprep.mubr.msk.f32.mxu1 %vm9899_vm1, %v9900_v27  ;;  %9375 = vmatprep.subr.mxu1 %v9900_v27 }
 0x553   :  { %v5843_v26 = vpop.f32.mrb[64].mxu1  ;;  %9361 = vmatpush3.msk.msra.mxu0 %vm6596_vm4, %v6581_v8  ;;  %9362 = vmatprep.mubr.msk.f32.mxu0 %vm9899_vm1, %v9900_v27 }
 0x554   :  { %v9289_v10 = vpop.f32.mrb[65].mxu1  ;;  %9368 = vmatmul.mubr.msk.f32.vlgmr.msra.gmra.mrb[80].mxu1 %vm3999_vm2, %v5843_v26  ;;  %9370 = vmatprep.subr.mxu0 %v9900_v27 }
 0x555   :  { %9376 = vmatpush3.msk.msra.mxu1 %vm6596_vm4, %v6584_v32  ;;  %9377 = vmatprep.mubr.msk.f32.mxu1 %vm9899_vm1, %v9900_v27 }
 0x556   :  { %9385 = vmatprep.subr.mxu1 %v9900_v27 }
 0x557   :  { %v5989_v5 = vpop.f32.mrb[66].mxu1 }
 0x558   :  { %v5770_v34 = vpop.f32.mrb[72].mxu0  ;;  %v9299_v61 = vpop.f32.mrb[67].mxu1  ;;  %9378 = vmatmul.mubr.msk.f32.vlgmr.msra.gmra.mrb[82].mxu1 %vm3999_vm2, %v5989_v5  ;;  %v8285_v5 = vld [vmem:[%s11690_s10] ss:$0 sm:$0xff] }
 0x559   :  { %v9284_v55 = vpop.f32.mrb[73].mxu0  ;;  %9363 = vmatmul.mubr.msk.f32.vlgmr.msra.gmra.mrb[88].mxu0 %vm3999_vm2, %v5770_v34  ;;  %9386 = vmatpush3.msk.msra.mxu1 %vm6596_vm4, %v6586_v41 }
 0x55a   :  { %9387 = vmatprep.mubr.msk.f32.mxu1 %vm9899_vm1, %v9900_v27  ;;  %9395 = vmatprep.subr.mxu1 %v9900_v27 }
 0x55b   :  { %v6135_v62 = vpop.f32.mrb[68].mxu1  ;;  %9371 = vmatpush3.msk.msra.mxu0 %vm6596_vm4, %v6583_v60  ;;  %9372 = vmatprep.mubr.msk.f32.mxu0 %vm9899_vm1, %v9900_v27 }
 0x55c   :  { %v9309_v16 = vpop.f32.mrb[69].mxu1  ;;  %9388 = vmatmul.mubr.msk.f32.vlgmr.msra.gmra.mrb[84].mxu1 %vm3999_vm2, %v6135_v62  ;;  %9380 = vmatprep.subr.mxu0 %v9900_v27  ;;  %v9872_v62 = vld [vmem:[%s11701_s26] sm:$0xff] }
 0x55d   :  { %9396 = vmatpush3.msk.msra.mxu1 %vm6596_vm4, %v6588_v58  ;;  %9397 = vmatprep.mubr.msk.f32.mxu1 %vm9899_vm1, %v9900_v27 }
 0x55e   :  { %9405 = vmatprep.subr.mxu1 %v9900_v27 }
 0x55f   :  { %v6281_v11 = vpop.f32.mrb[70].mxu1 }
 0x560   :  { %v5916_v28 = vpop.f32.mrb[74].mxu0  ;;  %v9319_v44 = vpop.f32.mrb[71].mxu1  ;;  %9398 = vmatmul.mubr.msk.f32.vlgmr.msra.gmra.mrb[86].mxu1 %vm3999_vm2, %v6281_v11 }
 0x561   :  { %v9294_v29 = vpop.f32.mrb[75].mxu0  ;;  %9373 = vmatmul.mubr.msk.f32.vlgmr.msra.gmra.mrb[90].mxu0 %vm3999_vm2, %v5916_v28  ;;  %9406 = vmatpush3.msk.msra.mxu1 %vm6596_vm4, %v6590_v3 }
 0x562   :  { %9381 = vmatpush3.msk.msra.mxu0 %vm6596_vm4, %v6585_v35  ;;  %9382 = vmatprep.mubr.msk.f32.mxu0 %vm9899_vm1, %v9900_v27 }
 0x563   :  { %9407 = vmatprep.mubr.msk.f32.mxu1 %vm9899_vm1, %v9900_v27  ;;  %9390 = vmatprep.subr.mxu0 %v9900_v27 }
 0x564   :  { %9415 = vmatprep.subr.mxu1 %v9900_v27 }
 0x567   :  { %v6427_v45 = vpop.f32.mrb[72].mxu1 }
 0x568   :  { %v6062_v20 = vpop.f32.mrb[76].mxu0  ;;  %v9329_v9 = vpop.f32.mrb[73].mxu1  ;;  %9408 = vmatmul.mubr.msk.f32.vlgmr.msra.gmra.mrb[88].mxu1 %vm3999_vm2, %v6427_v45 }
 0x569   :  { %v9304_v6 = vpop.f32.mrb[77].mxu0  ;;  %9383 = vmatmul.mubr.msk.f32.vlgmr.msra.gmra.mrb[92].mxu0 %vm3999_vm2, %v6062_v20  ;;  %9416 = vmatpush3.msk.msra.mxu1 %vm6596_vm4, %v6592_v43 }
 0x56a   :  { %9391 = vmatpush3.msk.msra.mxu0 %vm6596_vm4, %v6587_v0  ;;  %9392 = vmatprep.mubr.msk.f32.mxu0 %vm9899_vm1, %v9900_v27 }
 0x56b   :  { %9417 = vmatprep.mubr.msk.f32.mxu1 %vm9899_vm1, %v9900_v27  ;;  %9400 = vmatprep.subr.mxu0 %v9900_v27 }
 0x56f   :  { %v6573_v7 = vpop.f32.mrb[74].mxu1 }
 0x570   :  { %v6208_v19 = vpop.f32.mrb[78].mxu0  ;;  %v9339_v50 = vpop.f32.mrb[75].mxu1  ;;  %9418 = vmatmul.mubr.msk.f32.vlgmr.msra.gmra.mrb[90].mxu1 %vm3999_vm2, %v6573_v7 }
 0x571   :  { %v9314_v51 = vpop.f32.mrb[79].mxu0  ;;  %9393 = vmatmul.mubr.msk.f32.vlgmr.msra.gmra.mrb[94].mxu0 %vm3999_vm2, %v6208_v19 }
 0x572   :  { %9401 = vmatpush3.msk.msra.mxu0 %vm6596_vm4, %v6589_v39  ;;  %9402 = vmatprep.mubr.msk.f32.mxu0 %vm9899_vm1, %v9900_v27 }
 0x573   :  { %9410 = vmatprep.subr.mxu0 %v9900_v27 }
 0x577   :  { %v6354_v30 = vpop.f32.mrb[80].mxu0 }
 0x578   :  { %v9324_v12 = vpop.f32.mrb[81].mxu0  ;;  %9403 = vmatmul.mubr.msk.f32.vlgmr.msra.gmra.mrb[96].mxu0 %vm3999_vm2, %v6354_v30 }
 0x579   :  { %9411 = vmatpush3.msk.msra.mxu0 %vm6596_vm4, %v6591_v52  ;;  %9412 = vmatprep.mubr.msk.f32.mxu0 %vm9899_vm1, %v9900_v27 }
 0x57f   :  { %v6500_v13 = vpop.f32.mrb[82].mxu0 }
 0x580   :  { %v9334_v14 = vpop.f32.mrb[83].mxu0  ;;  %9413 = vmatmul.mubr.msk.f32.vlgmr.msra.gmra.mrb[98].mxu0 %vm3999_vm2, %v6500_v13 }
 0x61b   :  { %v6666_v15 = vpop.f32.mrb[84].mxu0 }
 0x61c   :  { %v9344_v17 = vpop.f32.mrb[85].mxu0  ;;  %v7810_v54 = vsel %vm61_vm0, %v6666_v15, 0.0 }
 0x61f   :  { %v6742_v31 = vpop.f32.mrb[76].mxu1 }
 0x620   :  { %v7811_v47 = vsel %vm61_vm0, %v6742_v31, 0.0  ;;  %v9349_v4 = vpop.f32.mrb[77].mxu1 }
 0x621   :  { %v7812_v21 = vadd.f32 %v7811_v47, %v7810_v54  ;;  %v9873_v47 = vld [vmem:[%s11701_s26 + $0x8] sm:$0xff] }
 0x623   :  { %v6894_v22 = vpop.f32.mrb[78].mxu1 }
 0x624   :  { %v6818_v24 = vpop.f32.mrb[86].mxu0  ;;  %v9359_v40 = vpop.f32.mrb[79].mxu1  ;;  %v7815_v63 = vsel %vm61_vm0, %v6894_v22, 0.0 }
 0x625   :  { %v7813_v56 = vsel %vm61_vm0, %v6818_v24, 0.0  ;;  %v9354_v46 = vpop.f32.mrb[87].mxu0 }
 0x626   :  { %v7814_v27 = vadd.f32 %v7813_v56, %v7812_v21 }
 0x627   :  { %v7046_v49 = vpop.f32.mrb[80].mxu1 }
 0x628   :  { %v7816_v48 = vadd.f32 %v7815_v63, %v7814_v27  ;;  %v9369_v57 = vpop.f32.mrb[81].mxu1  ;;  %v7819_v37 = vsel %vm61_vm0, %v7046_v49, 0.0 }
 0x62b   :  { %v7198_v36 = vpop.f32.mrb[82].mxu1 }
 0x62c   :  { %v6970_v1 = vpop.f32.mrb[88].mxu0  ;;  %v9379_v25 = vpop.f32.mrb[83].mxu1  ;;  %v7823_v41 = vsel %vm61_vm0, %v7198_v36, 0.0  ;;  %v7895_v36 = vld [vmem:[%s11693_s13] sm:$0xff] }
 0x62d   :  { %v7817_v33 = vsel %vm61_vm0, %v6970_v1, 0.0  ;;  %v9364_v53 = vpop.f32.mrb[89].mxu0  ;;  %v7896_v1 = vld [vmem:[%s11693_s13 + $0x8] sm:$0xff] }
 0x62e   :  { %v7818_v18 = vadd.f32 %v7817_v33, %v7816_v48  ;;  %v9754_v25 = vpack.c.bf16 %v7896_v1, %v7895_v36  ;;  %v7897_v33 = vld [vmem:[%s11693_s13 + $0x10] sm:$0xff]  ;;  %v7898_v53 = vld [vmem:[%s11693_s13 + $0x18] sm:$0xff] }
 0x62f   :  { %v7350_v38 = vpop.f32.mrb[84].mxu1 }
 0x630   :  { %v9389_v23 = vpop.f32.mrb[85].mxu1  ;;  %v7820_v42 = vadd.f32 %v7819_v37, %v7818_v18  ;;  %v7826_v3 = vsel %vm61_vm0, %v7350_v38, 0.0  ;;  %9755 = vmatprep.subr.bf16.mxu0 %v9754_v25  ;;  %v9758_v18 = vpack.c.bf16 %v7898_v53, %v7897_v33  ;;  %v7989_v37 = vld [vmem:[%s11695_s15] sm:$0xff]  ;;  %v7990_v38 = vld [vmem:[%s11695_s15 + $0x8] sm:$0xff] }
 0x631   :  { %9757 = vmatpush3.bf16.msra.mxu0 %v9754_v25  ;;  %v7991_v23 = vld [vmem:[%s11695_s15 + $0x10] sm:$0xff] }
 0x632   :  { %9759 = vmatprep.subr.bf16.mxu0 %v9758_v18 }
 0x633   :  { %v7502_v2 = vpop.f32.mrb[86].mxu1 }
 0x634   :  { %v7122_v8 = vpop.f32.mrb[90].mxu0  ;;  %v9399_v59 = vpop.f32.mrb[87].mxu1  ;;  %v7830_v6 = vsel %vm61_vm0, %v7502_v2, 0.0  ;;  %v7992_v2 = vld [vmem:[%s11695_s15 + $0x18] sm:$0xff] }
 0x635   :  { %v7821_v32 = vsel %vm61_vm0, %v7122_v8, 0.0  ;;  %v9374_v26 = vpop.f32.mrb[91].mxu0  ;;  %9761 = vmatpush3.bf16.msra.mxu0 %v9758_v18  ;;  %v9766_v8 = vpack.c.bf16 %v7992_v2, %v7991_v23  ;;  %v7993_v59 = vld [vmem:[%s11695_s15 + $0x20] sm:$0xff] }
 0x636   :  { %v7822_v10 = vadd.f32 %v7821_v32, %v7820_v42  ;;  %v9762_v42 = vpack.c.bf16 %v7990_v38, %v7989_v37  ;;  %v7994_v32 = vld [vmem:[%s11695_s15 + $0x28] sm:$0xff] }
 0x637   :  { %v9770_v26 = vpack.c.bf16 %v7994_v32, %v7993_v59 }
 0x638   :  { %v7824_v34 = vadd.f32 %v7823_v41, %v7822_v10  ;;  %9763 = vmatprep.subr.bf16.mxu1 %v9762_v42  ;;  %v7995_v10 = vld [vmem:[%s11695_s15 + $0x30] sm:$0xff]  ;;  %v7996_v41 = vld [vmem:[%s11695_s15 + $0x38] sm:$0xff] }
 0x639   :  { %9765 = vmatpush3.bf16.msra.mxu1 %v9762_v42 }
 0x63a   :  { %v7847_v61 = vadd.f32 %v8285_v5, %v7824_v34  ;;  %9767 = vmatprep.subr.bf16.mxu1 %v9766_v8  ;;  %v7997_v34 = vld [vmem:[%s11695_s15 + $0x40] sm:$0xff] }
 0x63b   :  { %v7654_v60 = vpop.f32.mrb[88].mxu1 }
 0x63c   :  { %v7274_v55 = vpop.f32.mrb[92].mxu0  ;;  %v9409_v58 = vpop.f32.mrb[89].mxu1  ;;  %v11562_v16 = vadd.f32 %v9872_v62, %v7847_v61  ;;  %v7834_v52 = vsel %vm61_vm0, %v7654_v60, 0.0  ;;  %v7998_v61 = vld [vmem:[%s11695_s15 + $0x48] sm:$0xff] }
 0x63d   :  { %v7825_v11 = vsel %vm61_vm0, %v7274_v55, 0.0  ;;  %v9384_v35 = vpop.f32.mrb[93].mxu0  ;;  %9769 = vmatpush3.bf16.msra.mxu1 %v9766_v8  ;;  %v9778_v60 = vpack.c.bf16 %v7998_v61, %v7997_v34  ;;  %v7999_v55 = vld [vmem:[%s11695_s15 + $0x50] sm:$0xff]  ;;  %v8000_v58 = vld [vmem:[%s11695_s15 + $0x58] sm:$0xff] }
 0x63e   :  { %v7827_v28 = vadd.f32 %v7826_v3, %v7825_v11  ;;  %v7853_v44 = vsel %vm61_vm0, %v11562_v16, 0.0  ;;  %9771 = vmatprep.subr.bf16.mxu1 %v9770_v26  ;;  %v9782_v62 = vpack.c.bf16 %v8000_v58, %v7999_v55  ;;  %v8001_v3 = vld [vmem:[%s11695_s15 + $0x60] sm:$0xff]  ;;  %v8002_v11 = vld [vmem:[%s11695_s15 + $0x68] sm:$0xff] }
 0x63f   :  { %7854 = vadd.xlane.f32.xlu0 %v7853_v44  ;;  %v9786_v35 = vpack.c.bf16 %v8002_v11, %v8001_v3 }
 0x641   :  { %9773 = vmatpush3.bf16.msra.mxu1 %v9770_v26 }
 0x643   :  { %v7806_v29 = vpop.f32.mrb[90].mxu1 }
 0x644   :  { %v7426_v43 = vpop.f32.mrb[94].mxu0  ;;  %v9419_v45 = vpop.f32.mrb[91].mxu1  ;;  %v7838_v17 = vsel %vm61_vm0, %v7806_v29, 0.0 }
 0x645   :  { %v7828_v0 = vsel %vm61_vm0, %v7426_v43, 0.0  ;;  %v9394_v20 = vpop.f32.mrb[95].mxu0  ;;  %v8286_v45 = vld [vmem:[%s11691_s11] ss:$0 sm:$0xff] }
 0x646   :  { %v7829_v9 = vadd.f32 %v7828_v0, %v7827_v28  ;;  %v8287_v20 = vld [vmem:[%s11692_s12] ss:$0 sm:$0xff] }
 0x648   :  { %v7831_v7 = vadd.f32 %v7830_v6, %v7829_v9 }
 0x64b   :  { %v7578_v39 = vpop.f32.mrb[96].mxu0 }
 0x64c   :  { %v7832_v19 = vsel %vm61_vm0, %v7578_v39, 0.0  ;;  %v9404_v50 = vpop.f32.mrb[97].mxu0 }
 0x64d   :  { %v7833_v51 = vadd.f32 %v7832_v19, %v7831_v7 }
 0x64f   :  { %v7835_v30 = vadd.f32 %v7834_v52, %v7833_v51 }
 0x653   :  { %v7730_v12 = vpop.f32.mrb[98].mxu0 }
 0x654   :  { %v7836_v13 = vsel %vm61_vm0, %v7730_v12, 0.0  ;;  %v9414_v14 = vpop.f32.mrb[99].mxu0  ;;  %v8003_v12 = vld [vmem:[%s11695_s15 + $0x70] sm:$0xff] }
 0x655   :  { %v7837_v15 = vadd.f32 %v7836_v13, %v7835_v30  ;;  %v8004_v13 = vld [vmem:[%s11695_s15 + $0x78] sm:$0xff]  ;;  %s9901_s15 = smov [#allocation2]  }
 0x656   :  { %v9790_v14 = vpack.c.bf16 %v8004_v13, %v8003_v12  ;;  %s8096_s18 = sshll.u32 %s9901_s15, 4  ;;  %s8097_s18 = int_to_ptr.vmem [resolvable:$true] %s8096_s18 }
 0x657   :  { %v7839_v31 = vadd.f32 %v7838_v17, %v7837_v15  ;;  %v8288_v15 = vld [vmem:[%s11694_s14] ss:$0 sm:$0xff]  ;;  %s9874_s14 = scalar_lea.vmem %s8097_s18, 256  ;;  %p9879_p1 = scmp.lt.s32.totalorder %s8097_s18, %s8097_s18 }
 0x658   :  { %p9875_p0 = scmp.ne.s32.totalorder %s8097_s18, %s9874_s14  ;;  %p9880_p2 = scmp.lt.s32.totalorder %s9874_s14, %s9874_s14 }
 0x659   :  { %v7848_v54 = vadd.f32 %v8285_v5, %v7839_v31  ;;  %v9774_v5 = vpack.c.bf16 %v7996_v41, %v7995_v10 }
 0x65a   :  { %p9881_p3 = por %p9880_p2, %p9879_p1 }
 0x65b   :  { %v11577_v4 = vadd.f32 %v9873_v47, %v7848_v54  ;;  %9775 = vmatprep.subr.bf16.mxu1 %v9774_v5 }
 0x65c   :  { %9777 = vmatpush3.bf16.msra.mxu1 %v9774_v5  ;;  %p9882_p4 = pnand %p9881_p3, %p9875_p0 }
 0x65d   :  { %v7856_v21 = vsel %vm61_vm0, %v11577_v4, 0.0  ;;  %9779 = vmatprep.subr.bf16.mxu1 %v9778_v60 }
 0x65e   :  { %7857 = vadd.xlane.f32.xlu1 %v7856_v21 }
 0x660   :  { %9781 = vmatpush3.bf16.msra.mxu1 %v9778_v60 }
 0x661   :  { %9783 = vmatprep.subr.bf16.mxu1 %v9782_v62 }
 0x664   :  { %9785 = vmatpush3.bf16.msra.mxu1 %v9782_v62 }
 0x665   :  { %9787 = vmatprep.subr.bf16.mxu1 %v9786_v35 }
 0x668   :  { %9789 = vmatpush3.bf16.msra.mxu1 %v9786_v35 }
 0x669   :  { %9791 = vmatprep.subr.bf16.mxu1 %v9790_v14 }
 0x66c   :  { %9793 = vmatpush3.bf16.msra.mxu1 %v9790_v14 }
 0x6cc   :  { %v7855_v22 = vpop.xlane.xlu0 %7854 }
 0x6cd   :  { %v7859_v24 = vmul.f32 0.03125, %v7855_v22 }
 0x6cf   :  { %v7861_v40 = vsub.f32 %v11562_v16, %v7859_v24  ;;  %v8291_v24 = vld [vmem:[%s11696_s16] ss:$0 sm:$0xff] }
 0x6d1   :  { %v7863_v56 = vmul.f32 %v7861_v40, %v7861_v40 }
 0x6d3   :  { %v7865_v46 = vsel %vm61_vm0, %v7863_v56, 0.0 }
 0x6d4   :  { %7866 = vadd.xlane.f32.xlu0 %v7865_v46 }
 0x6eb   :  { %v7858_v27 = vpop.xlane.xlu1 %7857 }
 0x6ec   :  { %v7860_v63 = vmul.f32 0.03125, %v7858_v27 }
 0x6ee   :  { %v11584_v49 = vsub.f32 %v11577_v4, %v7860_v63 }
 0x6f0   :  { %v7864_v48 = vmul.f32 %v11584_v49, %v11584_v49 }
 0x6f2   :  { %v7868_v57 = vsel %vm61_vm0, %v7864_v48, 0.0 }
 0x6f3   :  { %7869 = vadd.xlane.f32.xlu1 %v7868_v57 }
 0x761   :  { %v7867_v28 = vpop.xlane.xlu0 %7866 }
 0x762   :  { %v7871_v44 = vmul.f32 0.03125, %v7867_v28 }
 0x764   :  { %v7873_v29 = vadd.f32 1e-05, %v7871_v44 }
 0x766   :  { %9868 = vrsqrt.f32 %v7873_v29 }
 0x770   :  { %v9869_v43 = vpop.eup %9868 }
 0x771   :  { %v7877_v0 = vmul.f32 %v9869_v43, %v7861_v40 }
 0x773   :  { %v7885_v9 = vmul.f32 %v8286_v45, %v7877_v0 }
 0x775   :  { %v7893_v6 = vadd.f32 %v8287_v20, %v7885_v9 }
 0x777   :  { %9428 = vmatprep.mubr.msk.f32.mxu0 %vm61_vm0, %v7893_v6 }
 0x780   :  { %v7870_v7 = vpop.xlane.xlu1 %7869 }
 0x781   :  { %v7872_v39 = vmul.f32 0.03125, %v7870_v7 }
 0x783   :  { %v7874_v19 = vadd.f32 1e-05, %v7872_v39 }
 0x785   :  { %9870 = vrsqrt.f32 %v7874_v19 }
 0x78f   :  { %v9871_v50 = vpop.eup %9870 }
 0x790   :  { %v7878_v51 = vmul.f32 %v9871_v50, %v11584_v49 }
 0x792   :  { %v7886_v52 = vmul.f32 %v8286_v45, %v7878_v51 }
 0x794   :  { %v7894_v30 = vadd.f32 %v8287_v20, %v7886_v52 }
 0x796   :  { %9429 = vmatmul.mubr.msk.f32.vlgmr.msra.gmra.mrb[100].mxu0 %vm61_vm0, %v7894_v30 }
 0x869   :  { %v9430_v17 = vpop.f32.mrb[100].mxu0 }
 0x86a   :  { %v7984_v31 = vadd.f32 %v9430_v17, %v8288_v15  ;;  %v7978_v54 = vpop.f32.mrb[101].mxu0 }
 0x86b   :  { %v7979_v47 = vadd.f32 %v8288_v15, %v7978_v54 }
 0x86c   :  { %v7988_v22 = vmax.f32 %v7984_v31, 0.0 }
 0x86d   :  { %v7987_v21 = vmax.f32 %v7979_v47, 0.0 }
 0x86f   :  { %9463 = vmatprep.mubr.f32.mxu1 %v7987_v21 }
 0x870   :  { %9464 = vmatmul.mubr.f32.vlgmr.msra.gmra.mrb[92].mxu1 %v7988_v22 }
 0x943   :  { %v9465_v40 = vpop.f32.mrb[92].mxu1 }
 0x944   :  { %v8084_v56 = vadd.f32 %v9465_v40, %v8291_v24  ;;  %v8078_v46 = vpop.f32.mrb[93].mxu1 }
 0x945   :  { %v8079_v27 = vadd.f32 %v8291_v24, %v8078_v46 }
 0x946   :  { %v8088_v63 = vadd.f32 %v8084_v56, %v11577_v4 }
 0x947   :  { %v8087_v49 = vadd.f32 %v8079_v27, %v11562_v16 }
 0x948   :  { %8090 = vst.msk [vmem:[#allocation2 + $0x8] sm:$0xff] %vm61_vm0, %v8088_v63 }
 0x949   :  { %8089 = vst.msk [vmem:[#allocation2] sm:$0xff] %vm61_vm0, %v8087_v49 }
 0x94a   :  { %9885 = shalt.err (!%p9882_p4)
}
 0x94b   :  { %s9886_s10 = scalar_lea.hbm %s11697_s17, 256 }
 0x94c   :  { %p9887_p5 = scmp.ne.s32.totalorder %s11697_s17, %s9886_s10  ;;  %p9890_p6 = scmp.lt.u32.totalorder %s9886_s10, %s11697_s17 }
 0x94e   :  { %p9892_p7 = pnand %p9890_p6, %p9887_p5 }
 0x950   :  { %9895 = shalt.err (!%p9892_p7)
}
 0x951   :  { %s9902_s2 = smov 128   ;;  %s9903_s21 = smov 8  }
 0x952   :  { %8102 = dma.vmem_to_hbm [thread:$0]  %s8097_s18, 256, %s11697_s17, [#allocation3], %s9902_s2, %s9902_s2, %s9903_s21  }
 0x953   :  { %9896 = dma.done.wait [#allocation3], 256  }
 0x954   :  { %9897 = vsyncadd [#allocation3], 4294967040 }
 0x955   :  { %8106 = vsyncpa [#allocation3], 1 }

</bundles_post_ra>
